<compile_context>
chip_gen: v7x
topology: tpu7x:2x2x1
jax: 0.10.0
libtpu: 0.0.40
codegen_flags: <defaults>
</compile_context>

<pallas_src>
import math
import functools

import jax
import jax.numpy as jnp
from jax.experimental import pallas as pl
from jax.experimental.pallas import tpu as pltpu


# ----------------------------------------------------------------------------
# Pallas kernel: one encoder layer for a block of TB sequences.
# Grid = (batch_blocks, num_layers); out_ref is resident across the layer axis.
# ----------------------------------------------------------------------------
def _encoder_stack_kernel(
    x_ref,       # (TB, S, E)  f32   input activations (read only at layer 0)
    mask_ref,    # (TB, 1, S)  f32   1.0 = valid token, 0.0 = padding
    wqkv_ref, bqkv_ref,
    wo_ref, bo_ref,
    g1_ref, be1_ref,
    w1_ref, b1_ref,
    w2_ref, b2_ref,
    g2_ref, be2_ref,
    out_ref,     # (TB, S, E)  f32   resident accumulator across layers
    *, num_heads: int, weights_resident: bool,
):
    layer = pl.program_id(1)

    # Layer 0: seed the resident activation from the HBM input block.
    @pl.when(layer == 0)
    def _():
        out_ref[...] = x_ref[...]

    def W(ref):
        # Resident weights keep the full (L, ...) stack in VMEM -> dynamic
        # first-axis index; per-layer blocks arrive with a leading dim of 1.
        return ref[layer] if weights_resident else ref[0]

    x = out_ref[...]                       # (TB, S, E) f32, lives in VMEM
    TB, S, E = x.shape
    dh = E // num_heads
    scale = 1.0 / math.sqrt(dh)
    eps = 1e-5

    # Pad-key bias, hoisted out of the head loop (computed once per layer).
    mask = mask_ref[...]                   # (TB, 1, S)
    bias = jnp.where(mask > 0.5, jnp.float32(0.0), jnp.float32(-1e9))

    xf = x.reshape(TB * S, E)              # f32 residual stream
    xb = xf.astype(jnp.bfloat16)           # single bf16 cast for QKV

    # ---- fused QKV projection: (TB*S, E) x (E, 3E), bf16 in / f32 acc -----
    qkv = jnp.dot(xb, W(wqkv_ref), preferred_element_type=jnp.float32) + W(bqkv_ref)
    # scale folded into q once (f32), then one bf16 cast per tensor
    q = (qkv[:, :E] * scale).reshape(TB, S, E).astype(jnp.bfloat16)
    k = qkv[:, E:2 * E].reshape(TB, S, E).astype(jnp.bfloat16)
    v = qkv[:, 2 * E:].reshape(TB, S, E).astype(jnp.bfloat16)

    # ---- multi-head self-attention with the output projection folded in ---
    wo = W(wo_ref)                                       # (E, E) bf16
    attn = jnp.zeros((TB * S, E), jnp.float32)
    for h in range(num_heads):
        sl = slice(h * dh, (h + 1) * dh)
        scores = jnp.einsum("bqd,bkd->bqk", q[:, :, sl], k[:, :, sl],
                            preferred_element_type=jnp.float32)
        scores = scores + bias                           # (TB,S,S) + (TB,1,S)
        m = jnp.max(scores, axis=-1, keepdims=True)
        p = jnp.exp(scores - m)
        p = p / jnp.sum(p, axis=-1, keepdims=True)       # exact softmax
        head = jnp.einsum("bqk,bkd->bqd", p.astype(jnp.bfloat16), v[:, :, sl],
                          preferred_element_type=jnp.float32)
        # fold output projection: accumulate head_out @ wo[h*dh:(h+1)*dh, :]
        attn = attn + jnp.dot(head.reshape(TB * S, dh).astype(jnp.bfloat16),
                              wo[sl, :], preferred_element_type=jnp.float32)
    attn = attn + W(bo_ref)

    # ---- residual + LayerNorm 1 (two-pass variance, matches nn.LayerNorm) -
    h1 = xf + attn                                       # dropout1 == identity
    mu = jnp.mean(h1, axis=-1, keepdims=True)
    xc = h1 - mu
    var = jnp.mean(xc * xc, axis=-1, keepdims=True)
    h1 = xc * jax.lax.rsqrt(var + eps) * W(g1_ref) + W(be1_ref)

    # ---- feed-forward (bf16 matmuls, f32 accumulate) -----------------------
    ff = jnp.dot(h1.astype(jnp.bfloat16), W(w1_ref),
                 preferred_element_type=jnp.float32) + W(b1_ref)
    ff = jnp.maximum(ff, 0.0)
    ff = jnp.dot(ff.astype(jnp.bfloat16), W(w2_ref),
                 preferred_element_type=jnp.float32) + W(b2_ref)

    # ---- residual + LayerNorm 2 --------------------------------------------
    h2 = h1 + ff                                         # dropout2 == identity
    mu2 = jnp.mean(h2, axis=-1, keepdims=True)
    xc2 = h2 - mu2
    var2 = jnp.mean(xc2 * xc2, axis=-1, keepdims=True)
    h2 = xc2 * jax.lax.rsqrt(var2 + eps) * W(g2_ref) + W(be2_ref)

    out_ref[...] = h2.reshape(TB, S, E)


def encoder_stack_pallas(x, mask_f, layers, num_heads):
    """Run the full encoder stack in one pallas_call.

    x:       (N, S, E) f32
    mask_f:  (N, 1, S) f32, 1.0 = valid token
    layers:  dict of per-layer weights stacked along a leading layer dim
             (matmul weights in bf16, biases/LN params in f32).
    """
    N, S, E = x.shape
    num_layers = layers["wqkv"].shape[0]
    F = layers["w1"].shape[2]

    worder = ["wqkv", "bqkv", "wo", "bo", "g1", "be1",
              "w1", "b1", "w2", "b2", "g2", "be2"]
    weights = [layers[n] for n in worder]

    # ---- hardware-aware VMEM budget (v7x has only 64 MiB / TensorCore) -----
    try:
        info = pltpu.get_tpu_info()
        vmem_cap = int(getattr(info, "vmem_capacity_bytes", 128 * 2 ** 20))
    except Exception:
        vmem_cap = 128 * 2 ** 20
    budget = int(0.80 * vmem_cap)

    def nbytes(a):
        return int(a.size) * a.dtype.itemsize

    stacked_wbytes = sum(nbytes(w) for w in weights)
    per_layer_wbytes = max(1, stacked_wbytes // num_layers)

    # Keep the whole stacked weight set resident in VMEM when it is small:
    # removes the per-batch-block weight re-DMA entirely.
    weights_resident = stacked_wbytes <= int(0.35 * budget)

    # ---- pick the batch block size TB --------------------------------------
    target_rows = 512 if budget >= 90 * 2 ** 20 else 256   # bigger on 128 MiB parts

    def est_vmem(tb):
        rows = tb * S
        act = rows * E * 4
        wb = stacked_wbytes if weights_resident else 2 * per_layer_wbytes
        tmp = (rows * 3 * E * 4 + rows * 3 * E * 2          # qkv f32 + q/k/v bf16
               + 2 * tb * S * S * 4                          # scores + probs (1 head)
               + rows * E * 4                                # attn accumulator
               + rows * F * 4 + rows * F * 2 + rows * E * 4)  # FFN temporaries
        # x block + resident output block, each double-buffered
        return 2 * act + 2 * act + wb + tmp + (2 << 20)

    tb_cap = max(1, N // 2)   # >=2 batch blocks so 2-core chips can split the grid
    TB = 1
    for tb in range(1, N + 1):
        if (N % tb == 0 and tb <= tb_cap
                and tb * S <= max(target_rows, S)
                and est_vmem(tb) <= budget):
            TB = tb

    est = est_vmem(TB)
    vmem_limit = int(min(budget, max(32 * 2 ** 20, int(1.5 * est))))

    # ---- weight BlockSpecs ---------------------------------------------------
    def resident_spec(arr):
        nd = arr.ndim
        return pl.BlockSpec(arr.shape, lambda b, l, _nd=nd: (0,) * _nd)

    def layer_spec(arr, buffers=2):
        nd = arr.ndim
        idx = lambda b, l, _nd=nd: (l,) + (0,) * (_nd - 1)
        shape = (1,) + arr.shape[1:]
        if buffers == 2:
            return pl.BlockSpec(shape, idx)
        try:
            return pl.BlockSpec(shape, idx, pipeline_mode=pl.Buffered(buffers))
        except Exception:      # older BlockSpec without pipeline_mode
            return pl.BlockSpec(shape, idx)

    if weights_resident:
        weight_specs = [resident_spec(w) for w in weights]
    else:
        # single-buffer the big FFN weights when double-buffering would eat
        # too much of the (v7x) VMEM budget
        ffn_tight = 2 * 2 * (E * F * 2) > int(0.25 * budget)
        weight_specs = []
        for name, w in zip(worder, weights):
            bufs = 1 if (ffn_tight and name in ("w1", "w2")) else 2
            weight_specs.append(layer_spec(w, bufs))

    kernel = functools.partial(_encoder_stack_kernel, num_heads=num_heads,
                               weights_resident=weights_resident)
    return pl.pallas_call(
        kernel,
        out_shape=jax.ShapeDtypeStruct((N, S, E), jnp.float32),
        grid_spec=pltpu.PrefetchScalarGridSpec(
            num_scalar_prefetch=0,
            grid=(N // TB, num_layers),           # layer axis last (resident out)
            in_specs=[
                pl.BlockSpec((TB, S, E), lambda b, l: (b, 0, 0)),   # x
                pl.BlockSpec((TB, 1, S), lambda b, l: (b, 0, 0)),   # mask
                *weight_specs,
            ],
            out_specs=pl.BlockSpec((TB, S, E), lambda b, l: (b, 0, 0)),
        ),
        compiler_params=pltpu.CompilerParams(
            dimension_semantics=("parallel", "arbitrary"),
            vmem_limit_bytes=vmem_limit,
        ),
    )(x, mask_f, *weights)


# ----------------------------------------------------------------------------
# Plain-JAX glue: embedding, sinusoidal positional encoding, full encoder.
# ----------------------------------------------------------------------------
def sinusoidal_encoding(max_len, dim):
    pos = jnp.arange(max_len, dtype=jnp.float32)[:, None]
    div = jnp.exp(jnp.arange(0, dim, 2, dtype=jnp.float32)
                  * (-math.log(10000.0) / dim))
    pe = jnp.zeros((max_len, dim), dtype=jnp.float32)
    pe = pe.at[:, 0::2].set(jnp.sin(pos * div))
    pe = pe.at[:, 1::2].set(jnp.cos(pos * div))
    return pe


def transformer_encoder_forward(params, input_ids, src_padding_mask, num_heads):
    """Mirrors TransformerEncoder.forward (dropout = identity / eval mode)."""
    E = params["embedding"].shape[1]
    N, S = input_ids.shape
    # embedding lookup + sqrt(E) scaling + positional encoding (glue / gather)
    x = params["embedding"][input_ids] * math.sqrt(E)
    x = (x + params["pe"][:S][None, :, :]).astype(jnp.float32)
    # mask: 1.0 = valid token, 0.0 = pad (pad keys get -1e9 scores)
    mask_f = src_padding_mask.astype(jnp.float32).reshape(N, 1, S)
    return encoder_stack_pallas(x, mask_f, params["layers"], num_heads)


# ----------------------------------------------------------------------------
# Pure-JAX reference with the SAME precision policy (bf16 matmuls, f32 acc,
# exact softmax, two-pass LayerNorm) so it tracks the kernel tightly.
# ----------------------------------------------------------------------------
def _reference_forward(params, input_ids, src_padding_mask, num_heads):
    E = params["embedding"].shape[1]
    N, S = input_ids.shape
    x = params["embedding"][input_ids] * math.sqrt(E)
    x = (x + params["pe"][:S][None, :, :]).astype(jnp.float32)
    maskb = src_padding_mask.astype(jnp.float32)[:, None, :]       # (N,1,S)
    bias = jnp.where(maskb > 0.5, 0.0, -1e9)
    H = num_heads
    dh = E // H
    scale = 1.0 / math.sqrt(dh)
    L = params["layers"]
    nl = L["wqkv"].shape[0]

    def ln(h, g, b):
        mu = jnp.mean(h, -1, keepdims=True)
        xc = h - mu
        var = jnp.mean(xc * xc, -1, keepdims=True)
        return xc * jax.lax.rsqrt(var + 1e-5) * g + b

    for li in range(nl):
        xb = x.astype(jnp.bfloat16)
        qkv = jnp.einsum("nse,ef->nsf", xb, L["wqkv"][li],
                         preferred_element_type=jnp.float32) + L["bqkv"][li]
        q = (qkv[..., :E] * scale).astype(jnp.bfloat16)
        k = qkv[..., E:2 * E].astype(jnp.bfloat16)
        v = qkv[..., 2 * E:].astype(jnp.bfloat16)
        q = q.reshape(N, S, H, dh).transpose(0, 2, 1, 3)
        k = k.reshape(N, S, H, dh).transpose(0, 2, 1, 3)
        v = v.reshape(N, S, H, dh).transpose(0, 2, 1, 3)
        s = jnp.einsum("nhqd,nhkd->nhqk", q, k,
                       preferred_element_type=jnp.float32)
        s = s + bias[:, None, :, :]
        m = jnp.max(s, -1, keepdims=True)
        p = jnp.exp(s - m)
        p = p / jnp.sum(p, -1, keepdims=True)
        a = jnp.einsum("nhqk,nhkd->nhqd", p.astype(jnp.bfloat16), v,
                       preferred_element_type=jnp.float32)
        a = a.transpose(0, 2, 1, 3).reshape(N, S, E)
        a = jnp.einsum("nse,ef->nsf", a.astype(jnp.bfloat16), L["wo"][li],
                       preferred_element_type=jnp.float32) + L["bo"][li]
        x = ln(x + a, L["g1"][li], L["be1"][li])
        f1 = jnp.einsum("nse,ef->nsf", x.astype(jnp.bfloat16), L["w1"][li],
                        preferred_element_type=jnp.float32) + L["b1"][li]
        f1 = jnp.maximum(f1, 0.0)
        f2 = jnp.einsum("nsf,fe->nse", f1.astype(jnp.bfloat16), L["w2"][li],
                        preferred_element_type=jnp.float32) + L["b2"][li]
        x = ln(x + f2, L["g2"][li], L["be2"][li])
    return x


def init_params(key, vocab, hidden_dim, ff_dim, num_layers):
    E, F = hidden_dim, ff_dim
    keys = jax.random.split(key, 2 + num_layers)
    embedding = jax.random.normal(keys[0], (vocab, E), jnp.float32) * 0.02

    def xavier(k, shape):
        fan_in, fan_out = shape
        bound = math.sqrt(6.0 / (fan_in + fan_out))
        return jax.random.uniform(k, shape, jnp.float32, -bound, bound)

    wq, wk, wv, wo, w1, w2 = [], [], [], [], [], []
    for li in range(num_layers):
        lk = jax.random.split(keys[2 + li], 6)
        wq.append(xavier(lk[0], (E, E))); wk.append(xavier(lk[1], (E, E)))
        wv.append(xavier(lk[2], (E, E))); wo.append(xavier(lk[3], (E, E)))
        w1.append(xavier(lk[4], (E, F))); w2.append(xavier(lk[5], (F, E)))

    bkeys = jax.random.split(keys[1], 6)
    Lw = num_layers

    def bias(k, shape):
        return jax.random.uniform(k, shape, jnp.float32, -0.05, 0.05)

    bq = bias(bkeys[0], (Lw, 1, E))
    bk = bias(bkeys[1], (Lw, 1, E))
    bv = bias(bkeys[2], (Lw, 1, E))

    layers = dict(
        # fused QKV weight (L, E, 3E) in bf16 (one MXU stream instead of three)
        wqkv=jnp.concatenate([jnp.stack(wq), jnp.stack(wk), jnp.stack(wv)],
                             axis=-1).astype(jnp.bfloat16),
        bqkv=jnp.concatenate([bq, bk, bv], axis=-1),          # (L, 1, 3E) f32
        wo=jnp.stack(wo).astype(jnp.bfloat16),
        bo=bias(bkeys[3], (Lw, 1, E)),
        w1=jnp.stack(w1).astype(jnp.bfloat16),
        b1=bias(bkeys[4], (Lw, 1, F)),
        w2=jnp.stack(w2).astype(jnp.bfloat16),
        b2=bias(bkeys[5], (Lw, 1, E)),
        g1=jnp.ones((Lw, 1, E), jnp.float32), be1=jnp.zeros((Lw, 1, E), jnp.float32),
        g2=jnp.ones((Lw, 1, E), jnp.float32), be2=jnp.zeros((Lw, 1, E), jnp.float32),
    )
    return dict(embedding=embedding, pe=sinusoidal_encoding(5000, E), layers=layers)


if __name__ == "__main__":
    # small shapes consistent with the module's forward: (N, S) token ids
    N, S = 2, 8
    HIDDEN, FF, HEADS, LAYERS, VOCAB = 32, 64, 4, 2, 50

    key = jax.random.PRNGKey(0)
    k_par, k_ids = jax.random.split(key)
    params = init_params(k_par, VOCAB, HIDDEN, FF, LAYERS)

    input_ids = jax.random.randint(k_ids, (N, S), 0, VOCAB, dtype=jnp.int32)
    # src_padding_mask: True = valid token; last 2 tokens of sequence 1 are pad
    src_padding_mask = jnp.ones((N, S), dtype=bool).at[1, -2:].set(False)

    out = transformer_encoder_forward(params, input_ids, src_padding_mask, HEADS)
    out = jax.block_until_ready(out)

    ref = _reference_forward(params, input_ids, src_padding_mask, HEADS)
    assert out.shape == (N, S, HIDDEN)
    err = float(jnp.max(jnp.abs(out - ref)))
    # same precision policy on both sides -> error is dominated by f32
    # accumulation-order differences (typically < 2e-3 at these shapes)
    assert jnp.allclose(out, ref, atol=2e-2, rtol=2e-2), f"max abs err {err}"

    print("KERNEL_OK")
</pallas_src>

<mosaic_0001>
module attributes {stable_mosaic.version = 11 : i64} {
  func.func @_encoder_stack_kernel(%arg0: i32, %arg1: i32, %arg2: memref<1x8x32xf32, #tpu.memory_space<vmem>>, %arg3: memref<1x1x8xf32, #tpu.memory_space<vmem>>, %arg4: memref<2x32x96xbf16, #tpu.memory_space<vmem>>, %arg5: memref<2x1x96xf32, #tpu.memory_space<vmem>>, %arg6: memref<2x32x32xbf16, #tpu.memory_space<vmem>>, %arg7: memref<2x1x32xf32, #tpu.memory_space<vmem>>, %arg8: memref<2x1x32xf32, #tpu.memory_space<vmem>>, %arg9: memref<2x1x32xf32, #tpu.memory_space<vmem>>, %arg10: memref<2x32x64xbf16, #tpu.memory_space<vmem>>, %arg11: memref<2x1x64xf32, #tpu.memory_space<vmem>>, %arg12: memref<2x64x32xbf16, #tpu.memory_space<vmem>>, %arg13: memref<2x1x32xf32, #tpu.memory_space<vmem>>, %arg14: memref<2x1x32xf32, #tpu.memory_space<vmem>>, %arg15: memref<2x1x32xf32, #tpu.memory_space<vmem>>, %arg16: memref<1x8x32xf32, #tpu.memory_space<vmem>>) attributes {dimension_semantics = [#tpu.dimension_semantics<parallel>, #tpu.dimension_semantics<arbitrary>], iteration_bounds = array<i64: 2, 2>, scalar_prefetch = 0 : i64, scratch_operands = 0 : i64, tpu.core_type = #tpu.core_type<tc>, window_params = [{transform_indices = @transform_0, window_bounds = array<i64: 1, 8, 32>}, {transform_indices = @transform_1, window_bounds = array<i64: 1, 1, 8>}, {pipeline_mode = #tpu.pipeline_mode<synchronous>, transform_indices = @transform_2, window_bounds = array<i64: 2, 32, 96>}, {pipeline_mode = #tpu.pipeline_mode<synchronous>, transform_indices = @transform_3, window_bounds = array<i64: 2, 1, 96>}, {pipeline_mode = #tpu.pipeline_mode<synchronous>, transform_indices = @transform_4, window_bounds = array<i64: 2, 32, 32>}, {pipeline_mode = #tpu.pipeline_mode<synchronous>, transform_indices = @transform_5, window_bounds = array<i64: 2, 1, 32>}, {pipeline_mode = #tpu.pipeline_mode<synchronous>, transform_indices = @transform_6, window_bounds = array<i64: 2, 1, 32>}, {pipeline_mode = #tpu.pipeline_mode<synchronous>, transform_indices = @transform_7, window_bounds = array<i64: 2, 1, 32>}, {pipeline_mode = #tpu.pipeline_mode<synchronous>, transform_indices = @transform_8, window_bounds = array<i64: 2, 32, 64>}, {pipeline_mode = #tpu.pipeline_mode<synchronous>, transform_indices = @transform_9, window_bounds = array<i64: 2, 1, 64>}, {pipeline_mode = #tpu.pipeline_mode<synchronous>, transform_indices = @transform_10, window_bounds = array<i64: 2, 64, 32>}, {pipeline_mode = #tpu.pipeline_mode<synchronous>, transform_indices = @transform_11, window_bounds = array<i64: 2, 1, 32>}, {pipeline_mode = #tpu.pipeline_mode<synchronous>, transform_indices = @transform_12, window_bounds = array<i64: 2, 1, 32>}, {pipeline_mode = #tpu.pipeline_mode<synchronous>, transform_indices = @transform_13, window_bounds = array<i64: 2, 1, 32>}, {transform_indices = @transform_14, window_bounds = array<i64: 1, 8, 32>}]} {
    %c0_i32 = arith.constant 0 : i32
    %0 = arith.cmpi eq, %arg1, %c0_i32 : i32
    %1 = arith.extui %0 : i1 to i32
    %c0_i32_0 = arith.constant 0 : i32
    %2 = arith.cmpi ne, %1, %c0_i32_0 : i32
    scf.if %2 {
      %c0_71 = arith.constant 0 : index
      %c0_72 = arith.constant 0 : index
      %c0_73 = arith.constant 0 : index
      %207 = vector.load %arg2[%c0_71, %c0_72, %c0_73] : memref<1x8x32xf32, #tpu.memory_space<vmem>>, vector<1x8x32xf32>
      %c0_74 = arith.constant 0 : index
      %c0_75 = arith.constant 0 : index
      %c0_76 = arith.constant 0 : index
      %208 = vector.load %arg16[%c0_74, %c0_75, %c0_76] : memref<1x8x32xf32, #tpu.memory_space<vmem>>, vector<1x8x32xf32>
      tpu.vector_store %arg16[%c0_74, %c0_75, %c0_76], %207 {strides = array<i32>} : memref<1x8x32xf32, #tpu.memory_space<vmem>>, vector<1x8x32xf32>,
    } else {
    }
    %c0 = arith.constant 0 : index
    %c0_1 = arith.constant 0 : index
    %c0_2 = arith.constant 0 : index
    %3 = vector.load %arg16[%c0, %c0_1, %c0_2] : memref<1x8x32xf32, #tpu.memory_space<vmem>>, vector<1x8x32xf32>
    %c0_3 = arith.constant 0 : index
    %c0_4 = arith.constant 0 : index
    %c0_5 = arith.constant 0 : index
    %4 = vector.load %arg3[%c0_3, %c0_4, %c0_5] : memref<1x1x8xf32, #tpu.memory_space<vmem>>, vector<1x1x8xf32>
    %cst = arith.constant 5.000000e-01 : f32
    %5 = vector.broadcast %cst : f32 to vector<1x1x8xf32>
    %6 = arith.cmpf ogt, %4, %5 : vector<1x1x8xf32>
    %cst_6 = arith.constant 0.000000e+00 : f32
    %cst_7 = arith.constant -1.000000e+09 : f32
    %7 = vector.broadcast %cst_6 : f32 to vector<1x1x8xf32>
    %8 = vector.broadcast %cst_7 : f32 to vector<1x1x8xf32>
    %9 = arith.select %6, %7, %8 : vector<1x1x8xi1>, vector<1x1x8xf32>
    %10 = vector.shape_cast %3 : vector<1x8x32xf32> to vector<8x32xf32>
    %11 = arith.truncf %10 : vector<8x32xf32> to vector<8x32xbf16>
    %12 = arith.index_cast %arg1 : i32 to index
    %c0_8 = arith.constant 0 : index
    %c0_9 = arith.constant 0 : index
    %13 = vector.load %arg4[%12, %c0_8, %c0_9] : memref<2x32x96xbf16, #tpu.memory_space<vmem>>, vector<1x32x96xbf16>
    %14 = vector.shape_cast %13 : vector<1x32x96xbf16> to vector<32x96xbf16>
    %cst_10 = arith.constant dense<0.000000e+00> : vector<8x96xf32>
    %15 = tpu.matmul %11, %14, %cst_10 {dimension_numbers = #tpu.dot_dimension_numbers<[1], [0], [0], [1], [0, 0, 1, 1], [], []>} : vector<8x32xbf16>, vector<32x96xbf16>, vector<8x96xf32> -> vector<8x96xf32>
    %16 = arith.index_cast %arg1 : i32 to index
    %c0_11 = arith.constant 0 : index
    %c0_12 = arith.constant 0 : index
    %17 = vector.load %arg5[%16, %c0_11, %c0_12] : memref<2x1x96xf32, #tpu.memory_space<vmem>>, vector<1x1x96xf32>
    %18 = vector.shape_cast %17 : vector<1x1x96xf32> to vector<1x96xf32>
    %19 = vector.broadcast %18 : vector<1x96xf32> to vector<8x96xf32>
    %20 = arith.addf %15, %19 : vector<8x96xf32>
    %21 = vector.extract_strided_slice %20 {offsets = [0, 0], sizes = [8, 32], strides = [1, 1]} : vector<8x96xf32> to vector<8x32xf32>
    %cst_13 = arith.constant 0.353553385 : f32
    %22 = vector.broadcast %cst_13 : f32 to vector<8x32xf32>
    %23 = arith.mulf %21, %22 : vector<8x32xf32>
    %24 = vector.shape_cast %23 : vector<8x32xf32> to vector<1x8x32xf32>
    %25 = arith.truncf %24 : vector<1x8x32xf32> to vector<1x8x32xbf16>
    %26 = vector.extract_strided_slice %20 {offsets = [0, 32], sizes = [8, 32], strides = [1, 1]} : vector<8x96xf32> to vector<8x32xf32>
    %27 = vector.shape_cast %26 : vector<8x32xf32> to vector<1x8x32xf32>
    %28 = arith.truncf %27 : vector<1x8x32xf32> to vector<1x8x32xbf16>
    %29 = vector.extract_strided_slice %20 {offsets = [0, 64], sizes = [8, 32], strides = [1, 1]} : vector<8x96xf32> to vector<8x32xf32>
    %30 = vector.shape_cast %29 : vector<8x32xf32> to vector<1x8x32xf32>
    %31 = arith.truncf %30 : vector<1x8x32xf32> to vector<1x8x32xbf16>
    %32 = arith.index_cast %arg1 : i32 to index
    %c0_14 = arith.constant 0 : index
    %c0_15 = arith.constant 0 : index
    %33 = vector.load %arg6[%32, %c0_14, %c0_15] : memref<2x32x32xbf16, #tpu.memory_space<vmem>>, vector<1x32x32xbf16>
    %34 = vector.shape_cast %33 : vector<1x32x32xbf16> to vector<32x32xbf16>
    %cst_16 = arith.constant 0.000000e+00 : f32
    %35 = vector.broadcast %cst_16 : f32 to vector<8x32xf32>
    %36 = vector.extract_strided_slice %25 {offsets = [0, 0, 0], sizes = [1, 8, 8], strides = [1, 1, 1]} : vector<1x8x32xbf16> to vector<1x8x8xbf16>
    %37 = vector.extract_strided_slice %28 {offsets = [0, 0, 0], sizes = [1, 8, 8], strides = [1, 1, 1]} : vector<1x8x32xbf16> to vector<1x8x8xbf16>
    "tpu.trace_start"() <{level = 10 : i32, message = "bqd,bkd->bqk"}> : () -> ()
    %cst_17 = arith.constant dense<0.000000e+00> : vector<1x8x8xf32>
    %38 = tpu.matmul %36, %37, %cst_17 {dimension_numbers = #tpu.dot_dimension_numbers<[2], [2], [1], [1], [0, 0, 0, 1, 1, 1], [0], [0]>} : vector<1x8x8xbf16>, vector<1x8x8xbf16>, vector<1x8x8xf32> -> vector<1x8x8xf32>
    "tpu.trace_stop"() : () -> ()
    %39 = vector.broadcast %9 : vector<1x1x8xf32> to vector<1x8x8xf32>
    %40 = arith.addf %38, %39 : vector<1x8x8xf32>
    %cst_18 = arith.constant dense<0xFF800000> : vector<1x8xf32>
    %41 = vector.multi_reduction <maximumf>, %40, %cst_18 [2] : vector<1x8x8xf32> to vector<1x8xf32>
    %42 = vector.shape_cast %41 : vector<1x8xf32> to vector<1x8x1xf32>
    %43 = vector.broadcast %42 : vector<1x8x1xf32> to vector<1x8x8xf32>
    %44 = arith.subf %40, %43 : vector<1x8x8xf32>
    %45 = math.exp %44 : vector<1x8x8xf32>
    %cst_19 = arith.constant dense<0.000000e+00> : vector<1x8xf32>
    %46 = vector.multi_reduction <add>, %45, %cst_19 [2] : vector<1x8x8xf32> to vector<1x8xf32>
    %47 = vector.shape_cast %46 : vector<1x8xf32> to vector<1x8x1xf32>
    %48 = vector.broadcast %47 : vector<1x8x1xf32> to vector<1x8x8xf32>
    %49 = arith.divf %45, %48 : vector<1x8x8xf32>
    %50 = arith.truncf %49 : vector<1x8x8xf32> to vector<1x8x8xbf16>
    %51 = vector.extract_strided_slice %31 {offsets = [0, 0, 0], sizes = [1, 8, 8], strides = [1, 1, 1]} : vector<1x8x32xbf16> to vector<1x8x8xbf16>
    "tpu.trace_start"() <{level = 10 : i32, message = "bqk,bkd->bqd"}> : () -> ()
    %cst_20 = arith.constant dense<0.000000e+00> : vector<1x8x8xf32>
    %52 = tpu.matmul %50, %51, %cst_20 {dimension_numbers = #tpu.dot_dimension_numbers<[2], [1], [1], [2], [0, 0, 0, 1, 1, 2], [0], [0]>} : vector<1x8x8xbf16>, vector<1x8x8xbf16>, vector<1x8x8xf32> -> vector<1x8x8xf32>
    "tpu.trace_stop"() : () -> ()
    %53 = vector.shape_cast %52 : vector<1x8x8xf32> to vector<8x8xf32>
    %54 = arith.truncf %53 : vector<8x8xf32> to vector<8x8xbf16>
    %55 = vector.extract_strided_slice %34 {offsets = [0, 0], sizes = [8, 32], strides = [1, 1]} : vector<32x32xbf16> to vector<8x32xbf16>
    %cst_21 = arith.constant dense<0.000000e+00> : vector<8x32xf32>
    %56 = tpu.matmul %54, %55, %cst_21 {dimension_numbers = #tpu.dot_dimension_numbers<[1], [0], [0], [1], [0, 0, 1, 1], [], []>} : vector<8x8xbf16>, vector<8x32xbf16>, vector<8x32xf32> -> vector<8x32xf32>
    %57 = arith.addf %35, %56 : vector<8x32xf32>
    %58 = vector.extract_strided_slice %25 {offsets = [0, 0, 8], sizes = [1, 8, 8], strides = [1, 1, 1]} : vector<1x8x32xbf16> to vector<1x8x8xbf16>
    %59 = vector.extract_strided_slice %28 {offsets = [0, 0, 8], sizes = [1, 8, 8], strides = [1, 1, 1]} : vector<1x8x32xbf16> to vector<1x8x8xbf16>
    "tpu.trace_start"() <{level = 10 : i32, message = "bqd,bkd->bqk"}> : () -> ()
    %cst_22 = arith.constant dense<0.000000e+00> : vector<1x8x8xf32>
    %60 = tpu.matmul %58, %59, %cst_22 {dimension_numbers = #tpu.dot_dimension_numbers<[2], [2], [1], [1], [0, 0, 0, 1, 1, 1], [0], [0]>} : vector<1x8x8xbf16>, vector<1x8x8xbf16>, vector<1x8x8xf32> -> vector<1x8x8xf32>
    "tpu.trace_stop"() : () -> ()
    %61 = vector.broadcast %9 : vector<1x1x8xf32> to vector<1x8x8xf32>
    %62 = arith.addf %60, %61 : vector<1x8x8xf32>
    %cst_23 = arith.constant dense<0xFF800000> : vector<1x8xf32>
    %63 = vector.multi_reduction <maximumf>, %62, %cst_23 [2] : vector<1x8x8xf32> to vector<1x8xf32>
    %64 = vector.shape_cast %63 : vector<1x8xf32> to vector<1x8x1xf32>
    %65 = vector.broadcast %64 : vector<1x8x1xf32> to vector<1x8x8xf32>
    %66 = arith.subf %62, %65 : vector<1x8x8xf32>
    %67 = math.exp %66 : vector<1x8x8xf32>
    %cst_24 = arith.constant dense<0.000000e+00> : vector<1x8xf32>
    %68 = vector.multi_reduction <add>, %67, %cst_24 [2] : vector<1x8x8xf32> to vector<1x8xf32>
    %69 = vector.shape_cast %68 : vector<1x8xf32> to vector<1x8x1xf32>
    %70 = vector.broadcast %69 : vector<1x8x1xf32> to vector<1x8x8xf32>
    %71 = arith.divf %67, %70 : vector<1x8x8xf32>
    %72 = arith.truncf %71 : vector<1x8x8xf32> to vector<1x8x8xbf16>
    %73 = vector.extract_strided_slice %31 {offsets = [0, 0, 8], sizes = [1, 8, 8], strides = [1, 1, 1]} : vector<1x8x32xbf16> to vector<1x8x8xbf16>
    "tpu.trace_start"() <{level = 10 : i32, message = "bqk,bkd->bqd"}> : () -> ()
    %cst_25 = arith.constant dense<0.000000e+00> : vector<1x8x8xf32>
    %74 = tpu.matmul %72, %73, %cst_25 {dimension_numbers = #tpu.dot_dimension_numbers<[2], [1], [1], [2], [0, 0, 0, 1, 1, 2], [0], [0]>} : vector<1x8x8xbf16>, vector<1x8x8xbf16>, vector<1x8x8xf32> -> vector<1x8x8xf32>
    "tpu.trace_stop"() : () -> ()
    %75 = vector.shape_cast %74 : vector<1x8x8xf32> to vector<8x8xf32>
    %76 = arith.truncf %75 : vector<8x8xf32> to vector<8x8xbf16>
    %77 = vector.extract_strided_slice %34 {offsets = [8, 0], sizes = [8, 32], strides = [1, 1]} : vector<32x32xbf16> to vector<8x32xbf16>
    %cst_26 = arith.constant dense<0.000000e+00> : vector<8x32xf32>
    %78 = tpu.matmul %76, %77, %cst_26 {dimension_numbers = #tpu.dot_dimension_numbers<[1], [0], [0], [1], [0, 0, 1, 1], [], []>} : vector<8x8xbf16>, vector<8x32xbf16>, vector<8x32xf32> -> vector<8x32xf32>
    %79 = arith.addf %57, %78 : vector<8x32xf32>
    %80 = vector.extract_strided_slice %25 {offsets = [0, 0, 16], sizes = [1, 8, 8], strides = [1, 1, 1]} : vector<1x8x32xbf16> to vector<1x8x8xbf16>
    %81 = vector.extract_strided_slice %28 {offsets = [0, 0, 16], sizes = [1, 8, 8], strides = [1, 1, 1]} : vector<1x8x32xbf16> to vector<1x8x8xbf16>
    "tpu.trace_start"() <{level = 10 : i32, message = "bqd,bkd->bqk"}> : () -> ()
    %cst_27 = arith.constant dense<0.000000e+00> : vector<1x8x8xf32>
    %82 = tpu.matmul %80, %81, %cst_27 {dimension_numbers = #tpu.dot_dimension_numbers<[2], [2], [1], [1], [0, 0, 0, 1, 1, 1], [0], [0]>} : vector<1x8x8xbf16>, vector<1x8x8xbf16>, vector<1x8x8xf32> -> vector<1x8x8xf32>
    "tpu.trace_stop"() : () -> ()
    %83 = vector.broadcast %9 : vector<1x1x8xf32> to vector<1x8x8xf32>
    %84 = arith.addf %82, %83 : vector<1x8x8xf32>
    %cst_28 = arith.constant dense<0xFF800000> : vector<1x8xf32>
    %85 = vector.multi_reduction <maximumf>, %84, %cst_28 [2] : vector<1x8x8xf32> to vector<1x8xf32>
    %86 = vector.shape_cast %85 : vector<1x8xf32> to vector<1x8x1xf32>
    %87 = vector.broadcast %86 : vector<1x8x1xf32> to vector<1x8x8xf32>
    %88 = arith.subf %84, %87 : vector<1x8x8xf32>
    %89 = math.exp %88 : vector<1x8x8xf32>
    %cst_29 = arith.constant dense<0.000000e+00> : vector<1x8xf32>
    %90 = vector.multi_reduction <add>, %89, %cst_29 [2] : vector<1x8x8xf32> to vector<1x8xf32>
    %91 = vector.shape_cast %90 : vector<1x8xf32> to vector<1x8x1xf32>
    %92 = vector.broadcast %91 : vector<1x8x1xf32> to vector<1x8x8xf32>
    %93 = arith.divf %89, %92 : vector<1x8x8xf32>
    %94 = arith.truncf %93 : vector<1x8x8xf32> to vector<1x8x8xbf16>
    %95 = vector.extract_strided_slice %31 {offsets = [0, 0, 16], sizes = [1, 8, 8], strides = [1, 1, 1]} : vector<1x8x32xbf16> to vector<1x8x8xbf16>
    "tpu.trace_start"() <{level = 10 : i32, message = "bqk,bkd->bqd"}> : () -> ()
    %cst_30 = arith.constant dense<0.000000e+00> : vector<1x8x8xf32>
    %96 = tpu.matmul %94, %95, %cst_30 {dimension_numbers = #tpu.dot_dimension_numbers<[2], [1], [1], [2], [0, 0, 0, 1, 1, 2], [0], [0]>} : vector<1x8x8xbf16>, vector<1x8x8xbf16>, vector<1x8x8xf32> -> vector<1x8x8xf32>
    "tpu.trace_stop"() : () -> ()
    %97 = vector.shape_cast %96 : vector<1x8x8xf32> to vector<8x8xf32>
    %98 = arith.truncf %97 : vector<8x8xf32> to vector<8x8xbf16>
    %99 = vector.extract_strided_slice %34 {offsets = [16, 0], sizes = [8, 32], strides = [1, 1]} : vector<32x32xbf16> to vector<8x32xbf16>
    %cst_31 = arith.constant dense<0.000000e+00> : vector<8x32xf32>
    %100 = tpu.matmul %98, %99, %cst_31 {dimension_numbers = #tpu.dot_dimension_numbers<[1], [0], [0], [1], [0, 0, 1, 1], [], []>} : vector<8x8xbf16>, vector<8x32xbf16>, vector<8x32xf32> -> vector<8x32xf32>
    %101 = arith.addf %79, %100 : vector<8x32xf32>
    %102 = vector.extract_strided_slice %25 {offsets = [0, 0, 24], sizes = [1, 8, 8], strides = [1, 1, 1]} : vector<1x8x32xbf16> to vector<1x8x8xbf16>
    %103 = vector.extract_strided_slice %28 {offsets = [0, 0, 24], sizes = [1, 8, 8], strides = [1, 1, 1]} : vector<1x8x32xbf16> to vector<1x8x8xbf16>
    "tpu.trace_start"() <{level = 10 : i32, message = "bqd,bkd->bqk"}> : () -> ()
    %cst_32 = arith.constant dense<0.000000e+00> : vector<1x8x8xf32>
    %104 = tpu.matmul %102, %103, %cst_32 {dimension_numbers = #tpu.dot_dimension_numbers<[2], [2], [1], [1], [0, 0, 0, 1, 1, 1], [0], [0]>} : vector<1x8x8xbf16>, vector<1x8x8xbf16>, vector<1x8x8xf32> -> vector<1x8x8xf32>
    "tpu.trace_stop"() : () -> ()
    %105 = vector.broadcast %9 : vector<1x1x8xf32> to vector<1x8x8xf32>
    %106 = arith.addf %104, %105 : vector<1x8x8xf32>
    %cst_33 = arith.constant dense<0xFF800000> : vector<1x8xf32>
    %107 = vector.multi_reduction <maximumf>, %106, %cst_33 [2] : vector<1x8x8xf32> to vector<1x8xf32>
    %108 = vector.shape_cast %107 : vector<1x8xf32> to vector<1x8x1xf32>
    %109 = vector.broadcast %108 : vector<1x8x1xf32> to vector<1x8x8xf32>
    %110 = arith.subf %106, %109 : vector<1x8x8xf32>
    %111 = math.exp %110 : vector<1x8x8xf32>
    %cst_34 = arith.constant dense<0.000000e+00> : vector<1x8xf32>
    %112 = vector.multi_reduction <add>, %111, %cst_34 [2] : vector<1x8x8xf32> to vector<1x8xf32>
    %113 = vector.shape_cast %112 : vector<1x8xf32> to vector<1x8x1xf32>
    %114 = vector.broadcast %113 : vector<1x8x1xf32> to vector<1x8x8xf32>
    %115 = arith.divf %111, %114 : vector<1x8x8xf32>
    %116 = arith.truncf %115 : vector<1x8x8xf32> to vector<1x8x8xbf16>
    %117 = vector.extract_strided_slice %31 {offsets = [0, 0, 24], sizes = [1, 8, 8], strides = [1, 1, 1]} : vector<1x8x32xbf16> to vector<1x8x8xbf16>
    "tpu.trace_start"() <{level = 10 : i32, message = "bqk,bkd->bqd"}> : () -> ()
    %cst_35 = arith.constant dense<0.000000e+00> : vector<1x8x8xf32>
    %118 = tpu.matmul %116, %117, %cst_35 {dimension_numbers = #tpu.dot_dimension_numbers<[2], [1], [1], [2], [0, 0, 0, 1, 1, 2], [0], [0]>} : vector<1x8x8xbf16>, vector<1x8x8xbf16>, vector<1x8x8xf32> -> vector<1x8x8xf32>
    "tpu.trace_stop"() : () -> ()
    %119 = vector.shape_cast %118 : vector<1x8x8xf32> to vector<8x8xf32>
    %120 = arith.truncf %119 : vector<8x8xf32> to vector<8x8xbf16>
    %121 = vector.extract_strided_slice %34 {offsets = [24, 0], sizes = [8, 32], strides = [1, 1]} : vector<32x32xbf16> to vector<8x32xbf16>
    %cst_36 = arith.constant dense<0.000000e+00> : vector<8x32xf32>
    %122 = tpu.matmul %120, %121, %cst_36 {dimension_numbers = #tpu.dot_dimension_numbers<[1], [0], [0], [1], [0, 0, 1, 1], [], []>} : vector<8x8xbf16>, vector<8x32xbf16>, vector<8x32xf32> -> vector<8x32xf32>
    %123 = arith.addf %101, %122 : vector<8x32xf32>
    %124 = arith.index_cast %arg1 : i32 to index
    %c0_37 = arith.constant 0 : index
    %c0_38 = arith.constant 0 : index
    %125 = vector.load %arg7[%124, %c0_37, %c0_38] : memref<2x1x32xf32, #tpu.memory_space<vmem>>, vector<1x1x32xf32>
    %126 = vector.shape_cast %125 : vector<1x1x32xf32> to vector<1x32xf32>
    %127 = vector.broadcast %126 : vector<1x32xf32> to vector<8x32xf32>
    %128 = arith.addf %123, %127 : vector<8x32xf32>
    %129 = arith.addf %10, %128 : vector<8x32xf32>
    %cst_39 = arith.constant dense<0.000000e+00> : vector<8xf32>
    %130 = vector.multi_reduction <add>, %129, %cst_39 [1] : vector<8x32xf32> to vector<8xf32>
    %131 = vector.shape_cast %130 : vector<8xf32> to vector<8x1xf32>
    %cst_40 = arith.constant 3.200000e+01 : f32
    %132 = vector.broadcast %cst_40 : f32 to vector<8x1xf32>
    %133 = arith.divf %131, %132 : vector<8x1xf32>
    %134 = vector.broadcast %133 : vector<8x1xf32> to vector<8x32xf32>
    %135 = arith.subf %129, %134 : vector<8x32xf32>
    %136 = arith.mulf %135, %135 : vector<8x32xf32>
    %cst_41 = arith.constant dense<0.000000e+00> : vector<8xf32>
    %137 = vector.multi_reduction <add>, %136, %cst_41 [1] : vector<8x32xf32> to vector<8xf32>
    %138 = vector.shape_cast %137 : vector<8xf32> to vector<8x1xf32>
    %cst_42 = arith.constant 3.200000e+01 : f32
    %139 = vector.broadcast %cst_42 : f32 to vector<8x1xf32>
    %140 = arith.divf %138, %139 : vector<8x1xf32>
    %cst_43 = arith.constant 9.99999974E-6 : f32
    %141 = vector.broadcast %cst_43 : f32 to vector<8x1xf32>
    %142 = arith.addf %140, %141 : vector<8x1xf32>
    %143 = math.rsqrt %142 : vector<8x1xf32>
    %144 = vector.broadcast %143 : vector<8x1xf32> to vector<8x32xf32>
    %145 = arith.mulf %135, %144 : vector<8x32xf32>
    %146 = arith.index_cast %arg1 : i32 to index
    %c0_44 = arith.constant 0 : index
    %c0_45 = arith.constant 0 : index
    %147 = vector.load %arg8[%146, %c0_44, %c0_45] : memref<2x1x32xf32, #tpu.memory_space<vmem>>, vector<1x1x32xf32>
    %148 = vector.shape_cast %147 : vector<1x1x32xf32> to vector<1x32xf32>
    %149 = vector.broadcast %148 : vector<1x32xf32> to vector<8x32xf32>
    %150 = arith.mulf %145, %149 : vector<8x32xf32>
    %151 = arith.index_cast %arg1 : i32 to index
    %c0_46 = arith.constant 0 : index
    %c0_47 = arith.constant 0 : index
    %152 = vector.load %arg9[%151, %c0_46, %c0_47] : memref<2x1x32xf32, #tpu.memory_space<vmem>>, vector<1x1x32xf32>
    %153 = vector.shape_cast %152 : vector<1x1x32xf32> to vector<1x32xf32>
    %154 = vector.broadcast %153 : vector<1x32xf32> to vector<8x32xf32>
    %155 = arith.addf %150, %154 : vector<8x32xf32>
    %156 = arith.truncf %155 : vector<8x32xf32> to vector<8x32xbf16>
    %157 = arith.index_cast %arg1 : i32 to index
    %c0_48 = arith.constant 0 : index
    %c0_49 = arith.constant 0 : index
    %158 = vector.load %arg10[%157, %c0_48, %c0_49] : memref<2x32x64xbf16, #tpu.memory_space<vmem>>, vector<1x32x64xbf16>
    %159 = vector.shape_cast %158 : vector<1x32x64xbf16> to vector<32x64xbf16>
    %cst_50 = arith.constant dense<0.000000e+00> : vector<8x64xf32>
    %160 = tpu.matmul %156, %159, %cst_50 {dimension_numbers = #tpu.dot_dimension_numbers<[1], [0], [0], [1], [0, 0, 1, 1], [], []>} : vector<8x32xbf16>, vector<32x64xbf16>, vector<8x64xf32> -> vector<8x64xf32>
    %161 = arith.index_cast %arg1 : i32 to index
    %c0_51 = arith.constant 0 : index
    %c0_52 = arith.constant 0 : index
    %162 = vector.load %arg11[%161, %c0_51, %c0_52] : memref<2x1x64xf32, #tpu.memory_space<vmem>>, vector<1x1x64xf32>
    %163 = vector.shape_cast %162 : vector<1x1x64xf32> to vector<1x64xf32>
    %164 = vector.broadcast %163 : vector<1x64xf32> to vector<8x64xf32>
    %165 = arith.addf %160, %164 : vector<8x64xf32>
    %cst_53 = arith.constant 0.000000e+00 : f32
    %166 = vector.broadcast %cst_53 : f32 to vector<8x64xf32>
    %167 = arith.maximumf %165, %166 : vector<8x64xf32>
    %168 = arith.truncf %167 : vector<8x64xf32> to vector<8x64xbf16>
    %169 = arith.index_cast %arg1 : i32 to index
    %c0_54 = arith.constant 0 : index
    %c0_55 = arith.constant 0 : index
    %170 = vector.load %arg12[%169, %c0_54, %c0_55] : memref<2x64x32xbf16, #tpu.memory_space<vmem>>, vector<1x64x32xbf16>
    %171 = vector.shape_cast %170 : vector<1x64x32xbf16> to vector<64x32xbf16>
    %cst_56 = arith.constant dense<0.000000e+00> : vector<8x32xf32>
    %172 = tpu.matmul %168, %171, %cst_56 {dimension_numbers = #tpu.dot_dimension_numbers<[1], [0], [0], [1], [0, 0, 1, 1], [], []>} : vector<8x64xbf16>, vector<64x32xbf16>, vector<8x32xf32> -> vector<8x32xf32>
    %173 = arith.index_cast %arg1 : i32 to index
    %c0_57 = arith.constant 0 : index
    %c0_58 = arith.constant 0 : index
    %174 = vector.load %arg13[%173, %c0_57, %c0_58] : memref<2x1x32xf32, #tpu.memory_space<vmem>>, vector<1x1x32xf32>
    %175 = vector.shape_cast %174 : vector<1x1x32xf32> to vector<1x32xf32>
    %176 = vector.broadcast %175 : vector<1x32xf32> to vector<8x32xf32>
    %177 = arith.addf %172, %176 : vector<8x32xf32>
    %178 = arith.addf %155, %177 : vector<8x32xf32>
    %cst_59 = arith.constant dense<0.000000e+00> : vector<8xf32>
    %179 = vector.multi_reduction <add>, %178, %cst_59 [1] : vector<8x32xf32> to vector<8xf32>
    %180 = vector.shape_cast %179 : vector<8xf32> to vector<8x1xf32>
    %cst_60 = arith.constant 3.200000e+01 : f32
    %181 = vector.broadcast %cst_60 : f32 to vector<8x1xf32>
    %182 = arith.divf %180, %181 : vector<8x1xf32>
    %183 = vector.broadcast %182 : vector<8x1xf32> to vector<8x32xf32>
    %184 = arith.subf %178, %183 : vector<8x32xf32>
    %185 = arith.mulf %184, %184 : vector<8x32xf32>
    %cst_61 = arith.constant dense<0.000000e+00> : vector<8xf32>
    %186 = vector.multi_reduction <add>, %185, %cst_61 [1] : vector<8x32xf32> to vector<8xf32>
    %187 = vector.shape_cast %186 : vector<8xf32> to vector<8x1xf32>
    %cst_62 = arith.constant 3.200000e+01 : f32
    %188 = vector.broadcast %cst_62 : f32 to vector<8x1xf32>
    %189 = arith.divf %187, %188 : vector<8x1xf32>
    %cst_63 = arith.constant 9.99999974E-6 : f32
    %190 = vector.broadcast %cst_63 : f32 to vector<8x1xf32>
    %191 = arith.addf %189, %190 : vector<8x1xf32>
    %192 = math.rsqrt %191 : vector<8x1xf32>
    %193 = vector.broadcast %192 : vector<8x1xf32> to vector<8x32xf32>
    %194 = arith.mulf %184, %193 : vector<8x32xf32>
    %195 = arith.index_cast %arg1 : i32 to index
    %c0_64 = arith.constant 0 : index
    %c0_65 = arith.constant 0 : index
    %196 = vector.load %arg14[%195, %c0_64, %c0_65] : memref<2x1x32xf32, #tpu.memory_space<vmem>>, vector<1x1x32xf32>
    %197 = vector.shape_cast %196 : vector<1x1x32xf32> to vector<1x32xf32>
    %198 = vector.broadcast %197 : vector<1x32xf32> to vector<8x32xf32>
    %199 = arith.mulf %194, %198 : vector<8x32xf32>
    %200 = arith.index_cast %arg1 : i32 to index
    %c0_66 = arith.constant 0 : index
    %c0_67 = arith.constant 0 : index
    %201 = vector.load %arg15[%200, %c0_66, %c0_67] : memref<2x1x32xf32, #tpu.memory_space<vmem>>, vector<1x1x32xf32>
    %202 = vector.shape_cast %201 : vector<1x1x32xf32> to vector<1x32xf32>
    %203 = vector.broadcast %202 : vector<1x32xf32> to vector<8x32xf32>
    %204 = arith.addf %199, %203 : vector<8x32xf32>
    %205 = vector.shape_cast %204 : vector<8x32xf32> to vector<1x8x32xf32>
    %c0_68 = arith.constant 0 : index
    %c0_69 = arith.constant 0 : index
    %c0_70 = arith.constant 0 : index
    %206 = vector.load %arg16[%c0_68, %c0_69, %c0_70] : memref<1x8x32xf32, #tpu.memory_space<vmem>>, vector<1x8x32xf32>
    tpu.vector_store %arg16[%c0_68, %c0_69, %c0_70], %205 {strides = array<i32>} : memref<1x8x32xf32, #tpu.memory_space<vmem>>, vector<1x8x32xf32>,
    return
  }
  func.func @transform_0(%arg0: i32, %arg1: i32) -> (i32, i32, i32) {
    %c0_i32 = arith.constant 0 : i32
    %c0_i32_0 = arith.constant 0 : i32
    %c0_i32_1 = arith.constant 0 : i32
    return %arg0, %c0_i32, %c0_i32_0 : i32, i32, i32
  }
  func.func @transform_1(%arg0: i32, %arg1: i32) -> (i32, i32, i32) {
    %c0_i32 = arith.constant 0 : i32
    %c0_i32_0 = arith.constant 0 : i32
    %c0_i32_1 = arith.constant 0 : i32
    return %arg0, %c0_i32, %c0_i32_0 : i32, i32, i32
  }
  func.func @transform_2(%arg0: i32, %arg1: i32) -> (i32, i32, i32) {
    %c0_i32 = arith.constant 0 : i32
    %c0_i32_0 = arith.constant 0 : i32
    %c0_i32_1 = arith.constant 0 : i32
    %c0_i32_2 = arith.constant 0 : i32
    return %c0_i32, %c0_i32_0, %c0_i32_1 : i32, i32, i32
  }
  func.func @transform_3(%arg0: i32, %arg1: i32) -> (i32, i32, i32) {
    %c0_i32 = arith.constant 0 : i32
    %c0_i32_0 = arith.constant 0 : i32
    %c0_i32_1 = arith.constant 0 : i32
    %c0_i32_2 = arith.constant 0 : i32
    return %c0_i32, %c0_i32_0, %c0_i32_1 : i32, i32, i32
  }
  func.func @transform_4(%arg0: i32, %arg1: i32) -> (i32, i32, i32) {
    %c0_i32 = arith.constant 0 : i32
    %c0_i32_0 = arith.constant 0 : i32
    %c0_i32_1 = arith.constant 0 : i32
    %c0_i32_2 = arith.constant 0 : i32
    return %c0_i32, %c0_i32_0, %c0_i32_1 : i32, i32, i32
  }
  func.func @transform_5(%arg0: i32, %arg1: i32) -> (i32, i32, i32) {
    %c0_i32 = arith.constant 0 : i32
    %c0_i32_0 = arith.constant 0 : i32
    %c0_i32_1 = arith.constant 0 : i32
    %c0_i32_2 = arith.constant 0 : i32
    return %c0_i32, %c0_i32_0, %c0_i32_1 : i32, i32, i32
  }
  func.func @transform_6(%arg0: i32, %arg1: i32) -> (i32, i32, i32) {
    %c0_i32 = arith.constant 0 : i32
    %c0_i32_0 = arith.constant 0 : i32
    %c0_i32_1 = arith.constant 0 : i32
    %c0_i32_2 = arith.constant 0 : i32
    return %c0_i32, %c0_i32_0, %c0_i32_1 : i32, i32, i32
  }
  func.func @transform_7(%arg0: i32, %arg1: i32) -> (i32, i32, i32) {
    %c0_i32 = arith.constant 0 : i32
    %c0_i32_0 = arith.constant 0 : i32
    %c0_i32_1 = arith.constant 0 : i32
    %c0_i32_2 = arith.constant 0 : i32
    return %c0_i32, %c0_i32_0, %c0_i32_1 : i32, i32, i32
  }
  func.func @transform_8(%arg0: i32, %arg1: i32) -> (i32, i32, i32) {
    %c0_i32 = arith.constant 0 : i32
    %c0_i32_0 = arith.constant 0 : i32
    %c0_i32_1 = arith.constant 0 : i32
    %c0_i32_2 = arith.constant 0 : i32
    return %c0_i32, %c0_i32_0, %c0_i32_1 : i32, i32, i32
  }
  func.func @transform_9(%arg0: i32, %arg1: i32) -> (i32, i32, i32) {
    %c0_i32 = arith.constant 0 : i32
    %c0_i32_0 = arith.constant 0 : i32
    %c0_i32_1 = arith.constant 0 : i32
    %c0_i32_2 = arith.constant 0 : i32
    return %c0_i32, %c0_i32_0, %c0_i32_1 : i32, i32, i32
  }
  func.func @transform_10(%arg0: i32, %arg1: i32) -> (i32, i32, i32) {
    %c0_i32 = arith.constant 0 : i32
    %c0_i32_0 = arith.constant 0 : i32
    %c0_i32_1 = arith.constant 0 : i32
    %c0_i32_2 = arith.constant 0 : i32
    return %c0_i32, %c0_i32_0, %c0_i32_1 : i32, i32, i32
  }
  func.func @transform_11(%arg0: i32, %arg1: i32) -> (i32, i32, i32) {
    %c0_i32 = arith.constant 0 : i32
    %c0_i32_0 = arith.constant 0 : i32
    %c0_i32_1 = arith.constant 0 : i32
    %c0_i32_2 = arith.constant 0 : i32
    return %c0_i32, %c0_i32_0, %c0_i32_1 : i32, i32, i32
  }
  func.func @transform_12(%arg0: i32, %arg1: i32) -> (i32, i32, i32) {
    %c0_i32 = arith.constant 0 : i32
    %c0_i32_0 = arith.constant 0 : i32
    %c0_i32_1 = arith.constant 0 : i32
    %c0_i32_2 = arith.constant 0 : i32
    return %c0_i32, %c0_i32_0, %c0_i32_1 : i32, i32, i32
  }
  func.func @transform_13(%arg0: i32, %arg1: i32) -> (i32, i32, i32) {
    %c0_i32 = arith.constant 0 : i32
    %c0_i32_0 = arith.constant 0 : i32
    %c0_i32_1 = arith.constant 0 : i32
    %c0_i32_2 = arith.constant 0 : i32
    return %c0_i32, %c0_i32_0, %c0_i32_1 : i32, i32, i32
  }
  func.func @transform_14(%arg0: i32, %arg1: i32) -> (i32, i32, i32) {
    %c0_i32 = arith.constant 0 : i32
    %c0_i32_0 = arith.constant 0 : i32
    %c0_i32_1 = arith.constant 0 : i32
    return %arg0, %c0_i32, %c0_i32_0 : i32, i32, i32
  }
}

</mosaic_0001>

<bundles_post_ra>
// kernel: tpu_custom_call.1
= control target key start
LH: loop header
LB: loop body
LE: loop exit
PB: predicated region body
PF: predicated region fallthrough
CT: control target
= control target key end

     0   :  { %s2911_s0 = inlined_call_operand.hbm [shape: f32[2,8,32], index: 0, kind: input, shape index: {}]   ;;  %s2912_s1 = inlined_call_operand.vmem [shape: f32[2,1,8], index: 1, kind: input, shape index: {}]   ;;  %s2913_s2 = inlined_call_operand.vmem [shape: bf16[2,32,96], index: 2, kind: input, shape index: {}]   ;;  %s2914_s3 = inlined_call_operand.vmem [shape: f32[2,1,96], index: 3, kind: input, shape index: {}]   ;;  %s2915_s4 = inlined_call_operand.vmem [shape: bf16[2,32,32], index: 4, kind: input, shape index: {}]   ;;  %s2916_s5 = inlined_call_operand.hbm [shape: f32[2,1,32], index: 5, kind: input, shape index: {}]   ;;  %s2917_s6 = inlined_call_operand.hbm [shape: f32[2,1,32], index: 6, kind: input, shape index: {}]   ;;  %s2918_s7 = inlined_call_operand.hbm [shape: f32[2,1,32], index: 7, kind: input, shape index: {}]   ;;  %s2919_s8 = inlined_call_operand.vmem [shape: bf16[2,32,64], index: 8, kind: input, shape index: {}]   ;;  %s2920_s9 = inlined_call_operand.hbm [shape: f32[2,1,64], index: 9, kind: input, shape index: {}]   ;;  %s2921_s10 = inlined_call_operand.vmem [shape: bf16[2,64,32], index: 10, kind: input, shape index: {}]   ;;  %s2922_s11 = inlined_call_operand.vmem [shape: f32[2,1,32], index: 11, kind: input, shape index: {}]   ;;  %s2923_s12 = inlined_call_operand.vmem [shape: f32[2,1,32], index: 12, kind: input, shape index: {}]   ;;  %s2924_s13 = inlined_call_operand.vmem [shape: f32[2,1,32], index: 13, kind: input, shape index: {}]   ;;  %s2925_s14 = inlined_call_operand.hbm [shape: f32[2,8,32], index: 14, kind: output, shape index: {}]  }
   0x1   :  { %2933 = sst [smem:[#allocation17_spill]] %s2911_s0 }
   0x2   :  { %2934 = sst [smem:[#allocation18_spill]] %s2912_s1 }
   0x3   :  { %2935 = sst [smem:[#allocation19_spill]] %s2913_s2 }
   0x4   :  { %2936 = sst [smem:[#allocation20_spill]] %s2914_s3 }
   0x5   :  { %2937 = sst [smem:[#allocation21_spill]] %s2915_s4 }
   0x6   :  { %2938 = sst [smem:[#allocation22_spill]] %s2916_s5 }
   0x7   :  { %2939 = sst [smem:[#allocation23_spill]] %s2917_s6 }
   0x8   :  { %2940 = sst [smem:[#allocation24_spill]] %s2919_s8 }
   0x9   :  { %2941 = sst [smem:[#allocation25_spill]] %s2921_s10 }
   0xa   :  { %2942 = sst [smem:[#allocation26_spill]] %s2922_s11 }
   0xb   :  { %2943 = sst [smem:[#allocation27_spill]] %s2923_s12 }
   0xc   :  { %2944 = sst [smem:[#allocation28_spill]] %s2924_s13 }
   0xd   :  { %2945 = sst [smem:[#allocation29_spill]] %s2925_s14 }
   0xe   :  { %19 = vsyncpa [#allocation3], 0 }
   0xf   :  { %21 = vsyncpa [#allocation3 + $0x1], 0 }
  0x10   :  { %22 = vsyncpa [#allocation6], 0 }
  0x11   :  { %23 = vsyncpa [#allocation9], 0 }
  0x12   :  { %24 = vsyncpa [#allocation4], 0 }
  0x13   :  { %26 = vsyncpa [#allocation4 + $0x1], 0  ;;  %s2398_s29 = smov 0   ;;  %s2400_s30 = smov 0  }
  0x14   :  { %s2402_s15 = smov 0   ;;  %s2404_s16 = smov 0  }
  0x15   :  { %s2406_s17 = smov 0   ;;  %s2408_s18 = smov 0  }
  0x16   :  { %s2410_s19 = smov 0   ;;  %s2412_s20 = smov 0  }
  0x17 LB: > { %2946 = sst [smem:[#allocation16_spill]] %s2283_s16  ;;  %s2926_s21 = sadd.s32 4294967295, %s2299_s20   ;;  %s2299_s20 = sphi %s2412_s20, %s32_s20   ;;  %s2295_s19 = sphi %s2410_s19, %s2984_s19   ;;  %s2291_s18 = sphi %s2408_s18, %s2983_s18   ;;  %s2287_s17 = sphi %s2406_s17, %s2982_s17   ;;  %s2283_s16 = sphi %s2404_s16, %s2981_s16   ;;  %s2279_s15 = sphi %s2402_s15, %s2980_s15   ;;  %s2275_s30 = sphi %s2400_s30, %s2979_s30   ;;  %s2271_s29 = sphi %s2398_s29, %s2978_s29  }
  0x18   : > { %p1692_p0 = scmp.ge.s32.totalorder %s2299_s20, 1  ;;  %p2442_p1 = scmp.eq.s32.totalorder %s2926_s21, 0 }
  0x19   : > { %p379_p2 = scmp.lt.s32.totalorder %s2299_s20, 5  ;;  %s2301_s24 = smov [#allocation5]  }
  0x1a   : > { %s2947_s22 = scalar_select %p2442_p1, 1, 0 }
  0x1b   : > { %p2447_p3 = pnand %p1692_p0, %p379_p2  ;;  %s400_s25 = sshll.u32 %s2301_s24, 4  ;;  %s2451_s25 = int_to_ptr.vmem [resolvable:$true] %s400_s25 }
  0x1c   : > { %s2302_s27 = smov [#allocation8]   ;;  %s2303_s21 = smov [#allocation7]  }
  0x1d   : > { %s2948_s23 = scalar_select %p2447_p3, 1, 0 }
  0x1e   : > { %p1908_p4 = pneg %p2447_p3  ;;  %s426_s28 = sshll.u32 %s2302_s27, 4  ;;  %s2461_s28 = int_to_ptr.vmem [resolvable:$true] %s426_s28 }
  0x1f   : > { %s2463_s14 = sshll.u32 %s2303_s21, 4  ;;  %s2950_s5 = sld [smem:[#allocation22_spill]]  ;;  %s414_s14 = int_to_ptr.vmem [resolvable:$true] %s2463_s14 }
  0x20   : > { %p2457_p5 = pnand %p1908_p4, %p2442_p1 }
  0x22   : > { %p2473_p7 = pneg %p2457_p5 }
  0x25   : > { %s2051_s24 = scalar_lea.hbm %s2950_s5, 32 }
  0x26   : > { %p2052_p6 = scmp.ne.s32.totalorder %s2950_s5, %s2051_s24  ;;  %p2058_p10 = scmp.lt.u32.totalorder %s2051_s24, %s2950_s5 }
  0x28   : > { %p2054_p8 = pnand %p2473_p7, %p2052_p6 }
  0x2a   : > { %p2055_p9 = pneg %p2054_p8 }
  0x2c   : > { %p2060_p11 = pnand %p2058_p10, %p2055_p9 }
  0x2e   : > { %2063 = shalt.err (!%p2060_p11)
}
  0x2f   : > { %s2064_s10 = scalar_lea.vmem %s2451_s25, 32  ;;  %p2072_p2 = scmp.lt.s32.totalorder %s2451_s25, %s2451_s25 }
  0x30   : > { %p2065_p12 = scmp.ne.s32.totalorder %s2451_s25, %s2064_s10  ;;  %p2073_p4 = scmp.lt.s32.totalorder %s2064_s10, %s2064_s10 }
  0x32   : > { %p2067_p13 = pnand %p2065_p12, %p2473_p7  ;;  %p2074_p6 = por %p2073_p4, %p2072_p2 }
  0x34   : > { %p2068_p0 = pneg %p2067_p13 }
  0x36   : > { %p2075_p8 = pnand %p2074_p6, %p2068_p0 }
  0x38   : > { %2078 = shalt.err (!%p2075_p8)
}
  0x39   : > { %s2304_s11 = smov 16   ;;  %s2305_s12 = smov 1  }
  0x3a   : > { %1911 = dma.hbm_to_vmem [thread:$0]  (!%p2457_p5), %s2950_s5, 32, %s2451_s25, [#allocation6], %s2304_s11, %s2304_s11, %s2305_s12  }
  0x3b   : > { %s2079_s10 = scalar_lea.hbm %s2918_s7, 32 }
  0x3c   : > { %p2080_p9 = scmp.ne.s32.totalorder %s2918_s7, %s2079_s10  ;;  %p2086_p12 = scmp.lt.u32.totalorder %s2079_s10, %s2918_s7 }
  0x3e   : > { %p2082_p10 = pnand %p2080_p9, %p2473_p7 }
  0x40   : > { %p2083_p11 = pneg %p2082_p10 }
  0x42   : > { %p2088_p13 = pnand %p2086_p12, %p2083_p11 }
  0x44   : > { %2091 = shalt.err (!%p2088_p13)
}
  0x45   : > { %s2092_s25 = scalar_lea.vmem %s2461_s28, 32  ;;  %p2100_p6 = scmp.lt.s32.totalorder %s2461_s28, %s2461_s28 }
  0x46   : > { %p2093_p0 = scmp.ne.s32.totalorder %s2461_s28, %s2092_s25  ;;  %p2101_p8 = scmp.lt.s32.totalorder %s2092_s25, %s2092_s25 }
  0x48   : > { %p2095_p2 = pnand %p2093_p0, %p2473_p7  ;;  %p2102_p9 = por %p2101_p8, %p2100_p6 }
  0x4a   : > { %p2096_p4 = pneg %p2095_p2 }
  0x4c   : > { %p2103_p10 = pnand %p2102_p9, %p2096_p4 }
  0x4e   : > { %2106 = shalt.err (!%p2103_p10)
}
  0x4f   : > { %1917 = dma.hbm_to_vmem [thread:$0]  (!%p2457_p5), %s2918_s7, 32, %s2461_s28, [#allocation9], %s2304_s11, %s2304_s11, %s2305_s12  }
  0x50   : > { %s2952_s6 = sld [smem:[#allocation23_spill]] }
  0x56   : > { %s2107_s13 = scalar_lea.hbm %s2952_s6, 32 }
  0x57   : > { %p2108_p11 = scmp.ne.s32.totalorder %s2952_s6, %s2107_s13  ;;  %p2114_p0 = scmp.lt.u32.totalorder %s2107_s13, %s2952_s6 }
  0x59   : > { %p2110_p12 = pnand %p2108_p11, %p2473_p7 }
  0x5b   : > { %p2111_p13 = pneg %p2110_p12 }
  0x5d   : > { %p2116_p2 = pnand %p2114_p0, %p2111_p13 }
  0x5f   : > { %2119 = shalt.err (!%p2116_p2)
}
  0x60   : > { %s2120_s25 = scalar_lea.vmem %s414_s14, 32  ;;  %p2128_p9 = scmp.lt.s32.totalorder %s414_s14, %s414_s14 }
  0x61   : > { %p2121_p4 = scmp.ne.s32.totalorder %s414_s14, %s2120_s25  ;;  %p2129_p10 = scmp.lt.s32.totalorder %s2120_s25, %s2120_s25 }
  0x63   : > { %p2123_p6 = pnand %p2121_p4, %p2473_p7  ;;  %p2130_p3 = por %p2129_p10, %p2128_p9 }
  0x65   : > { %p2124_p8 = pneg %p2123_p6 }
  0x67   : > { %p2131_p1 = pnand %p2130_p3, %p2124_p8 }
  0x69   : > { %2134 = shalt.err (!%p2131_p1)
}
  0x6a   : > { %1914 = dma.hbm_to_vmem [thread:$0]  (!%p2457_p5), %s2952_s6, 32, %s414_s14, [#allocation6], %s2304_s11, %s2304_s11, %s2305_s12  }
  0x6b   : > { %s2306_s3 = smov [#allocation10]   ;;  %s2135_s24 = scalar_lea.hbm %s2920_s9, 32 }
  0x6c   : > { %s442_s8 = sshll.u32 %s2306_s3, 4  ;;  %p2136_p1 = scmp.ne.s32.totalorder %s2920_s9, %s2135_s24  ;;  %s443_s8 = int_to_ptr.vmem [resolvable:$true] %s442_s8 }
  0x6d   : > { %p2142_p12 = scmp.lt.u32.totalorder %s2135_s24, %s2920_s9 }
  0x6e   : > { %p2138_p3 = pnand %p2136_p1, %p2473_p7 }
  0x70   : > { %p2139_p11 = pneg %p2138_p3 }
  0x72   : > { %p2144_p13 = pnand %p2142_p12, %p2139_p11 }
  0x74   : > { %2147 = shalt.err (!%p2144_p13)
}
  0x75   : > { %s2148_s14 = scalar_lea.vmem %s443_s8, 32  ;;  %p2156_p6 = scmp.lt.s32.totalorder %s443_s8, %s443_s8 }
  0x76   : > { %p2149_p0 = scmp.ne.s32.totalorder %s443_s8, %s2148_s14  ;;  %p2157_p8 = scmp.lt.s32.totalorder %s2148_s14, %s2148_s14 }
  0x78   : > { %p2151_p2 = pnand %p2149_p0, %p2473_p7  ;;  %p2158_p9 = por %p2157_p8, %p2156_p6 }
  0x7a   : > { %p2152_p4 = pneg %p2151_p2 }
  0x7c   : > { %p2159_p10 = pnand %p2158_p9, %p2152_p4 }
  0x7e   : > { %2162 = shalt.err (!%p2159_p10)
}
  0x7f   : > { %1920 = dma.hbm_to_vmem [thread:$0]  (!%p2457_p5), %s2920_s9, 32, %s443_s8, [#allocation9], %s2304_s11, %s2304_s11, %s2305_s12  }
  0x80   : > { %s1691_s4 = sadd.s32 4294967294, %s2299_s20   ;;  %s41_s26 = sadd.s32 1, %s2291_s18 }
  0x81   : > { %p42_p7 = scmp.ge.s32.totalorder %s41_s26, 2  ;;  %s44_s3 = sadd.s32 1, %s2295_s19 }
  0x82   : > { %s51_s16 = sadd.s32 1, %s2279_s15  ;;  %p58_p1 = scmp.ne.s32.totalorder %s2279_s15, %s2275_s30 }
  0x83   : > { %s2986_s26 = smov (%p42_p7, %s41_s26), 0  ;;  %s2988_s3 = smov (!%p42_p7, %s44_s3), %s2295_s19 }
  0x84   : > { %p59_p3 = scmp.eq.s32.totalorder %s2299_s20, 0  ;;  %p64_p11 = scmp.ne.s32.totalorder %s2275_s30, %s2271_s29 }
  0x85   : > { %p46_p12 = scmp.ge.s32.totalorder %s2988_s3, 2  ;;  %s2953_s13 = sadd.s32 4294967295, %s2299_s20  }
  0x86   : > { %p366_p13 = scmp.eq.s32.totalorder %s2953_s13, 3  ;;  %p2580_p5 = por %p59_p3, %p58_p1 }
  0x87   : > { %p2955_p0 = scmp.ne.s32.totalorder %s2947_s22, 0  ;;  %s2990_s3 = smov (%p46_p12, %s2988_s3), 0 }
  0x88   : > { %p2592_p4 = por %p366_p13, %p58_p1  ;;  %p372_p6 = scmp.eq.s32.totalorder %s1691_s4, 3 }
  0x89   : > { %p2586_p2 = por %p2955_p0, %p64_p11  ;;  %s48_s24 = ssub.s32 %s2295_s19, %s2990_s3 }
  0x8a   : > { %s2957_s8 = scalar_select %p2592_p4, 1, 0 }
  0x8b   : > { %p1933_p8 = scmp.lt.s32.totalorder %s2299_s20, 4  ;;  %p49_p9 = scmp.eq.s32.totalorder %s48_s24, 0 }
  0x8c   : > { %p2599_p10 = por %p372_p6, %p64_p11  ;;  %s468_s21 = sand.u32 1, %s2279_s15  }
  0x8d   : > { %s1699_s10 = sshll.u32 %s2295_s19, 7  ;;  %s1698_s14 = sshll.u32 %s468_s21, 3 }
  0x8e   : > { %s2958_s27 = scalar_select %p2599_p10, 1, 0 }
  0x8f   : > { %s2606_s25 = scalar_select %p49_p9, %s2279_s15, %s51_s16  }
  0x90   : > { %s2959_s0 = sld [smem:[#allocation17_spill]]  ;;  %s472_s4 = scalar_lea.vmem [#allocation2], %s1698_s14 }
  0x91   : > { %s479_s24 = sshll.u32 %s472_s4, 4  ;;  %p2615_p7 = pnand %p1933_p8, %p2580_p5  ;;  %s2619_s24 = int_to_ptr.vmem [resolvable:$true] %s479_s24 }
  0x92   : > { %s469_s16 = scalar_lea.sflag [#allocation3], %s468_s21 }
  0x93   : > { %p2165_p3 = pneg %p2615_p7 }
  0x96   : > { %s2611_s13 = scalar_lea.hbm %s2959_s0, %s1699_s10  ;;  %s2168_s11 = scalar_lea.hbm %s2959_s0, 256 }
  0x97   : > { %s2163_s6 = scalar_lea.hbm %s2611_s13, 128  ;;  %p2169_p13 = scmp.lt.u32.totalorder %s2611_s13, %s2959_s0 }
  0x98   : > { %p2164_p1 = scmp.ne.s32.totalorder %s2611_s13, %s2163_s6  ;;  %p2170_p5 = scmp.lt.u32.totalorder %s2168_s11, %s2163_s6 }
  0x99   : > { %p2172_p6 = scmp.lt.u32.totalorder %s2163_s6, %s2611_s13 }
  0x9a   : > { %p2166_p11 = pnand %p2165_p3, %p2164_p1  ;;  %p2171_p0 = por %p2170_p5, %p2169_p13 }
  0x9c   : > { %p2167_p12 = pneg %p2166_p11  ;;  %p2173_p8 = por %p2172_p6, %p2171_p0 }
  0x9e   : > { %p2174_p9 = pnand %p2173_p8, %p2167_p12 }
  0xa0   : > { %2177 = shalt.err (!%p2174_p9)
}
  0xa1   : > { %s2178_s21 = scalar_lea.vmem %s2619_s24, 128  ;;  %s2307_s4 = smov [#allocation2]  }
  0xa2   : > { %p2179_p1 = scmp.ne.s32.totalorder %s2619_s24, %s2178_s21  ;;  %s2183_s10 = sshll.u32 %s2307_s4, 4  ;;  %s2184_s10 = int_to_ptr.vmem [resolvable:$false] %s2183_s10 }
  0xa3   : > { %s2185_s14 = scalar_lea.vmem %s2184_s10, 256  ;;  %p2186_p4 = scmp.lt.s32.totalorder %s2619_s24, %s2184_s10 }
  0xa4   : > { %p2181_p11 = pnand %p2179_p1, %p2165_p3  ;;  %p2187_p13 = scmp.lt.s32.totalorder %s2185_s14, %s2178_s21 }
  0xa6   : > { %p2182_p10 = pneg %p2181_p11  ;;  %p2188_p5 = por %p2187_p13, %p2186_p4 }
  0xa8   : > { %p2189_p0 = pnand %p2188_p5, %p2182_p10 }
  0xaa   : > { %2192 = shalt.err (!%p2189_p0)
}
  0xab   : > { %1924 = dma.hbm_to_vmem [thread:$0]  (!%p2615_p7), %s2611_s13, 128, %s2619_s24, %s469_s16  }
  0xac   : > { %p2961_p12 = scmp.ne.s32.totalorder %s2948_s23, 0 }
  0xad   : > { %s2649_s6 = sand.u32 (!%p2961_p12), 1, %s2275_s30  }
  0xae   : > { %494 = sbr.rel (%p2961_p12) target bundleno = 3894 (0xf36), region = 76  ;;  %s1701_s11 = sshll.u32 (!%p2961_p12), %s2649_s6, 3 }
  0xaf   : > { %s497_s28 = scalar_lea.sflag (!%p2961_p12), [#allocation3], %s2649_s6  ;;  %s500_s2 = scalar_lea.vmem (!%p2961_p12), [#allocation2], %s1701_s11 }
  0xb5   : > { %2254 = dma.done.wait (%p2586_p2), %s497_s28, 128  }
  0xb6   : > { %2256 = vsyncadd (%p2586_p2), %s497_s28, 4294967168  ;;  %p2962_p4 = scmp.ne.s32.totalorder %s2947_s22, 0 }
  0xb8   : > { %2258 = dma.done.wait (%p2962_p4), [#allocation6], 64  }
  0xb9   : > { %2260 = vsyncadd (%p2962_p4), [#allocation6], 4294967232 }
  0xba   : > { %2262 = dma.done.wait (%p2962_p4), [#allocation9], 64  }
  0xbb   : > { %2264 = vsyncadd (%p2962_p4), [#allocation9], 4294967232  ;;  %p564_p10 = scmp.lt.s32.totalorder %s2287_s17, 1  ;;  %s2963_s1 = sld [smem:[#allocation18_spill]] }
  0xbc   : > { %s2673_s24 = scalar_lea.vmem [#allocation11], %s1701_s11  ;;  %s2964_s16 = sld [smem:[#allocation16_spill]] }
  0xbd   : > { %s2667_s5 = scalar_select %p564_p10, %s2287_s17, 1 }
  0xc1   : > { %s566_s13 = scalar_lea.vmem %s2963_s1, %s2667_s5 }
  0xc2   : > { %p1707_p2 = scmp.ne.s32.totalorder %s2964_s16, 0 }
  0xc3   : > { %v572_v0 = vld [vmem:[%s500_s2] sm:$0xff] (!%p1707_p2)  ;;  %vm573_vm0 = vcmask (!%p1707_p2), 261120  }
  0xc4   : > { %571 = sbr.rel (%p1707_p2) target bundleno = 203 (0xcb), region = 100  ;;  %574 = vst.msk [vmem:[%s2673_s24] sm:$0xff] (!%p1707_p2), %vm573_vm0, %v572_v0 }
  0xcb PF: > { %s2965_s22 = sld [smem:[#allocation16_spill]]  ;;  %v2308_v1 = vmov 0.0   ;;  %s2966_s14 = sld [smem:[#allocation19_spill]]  ;;  %vm2309_vm1 = vmmov 0   ;;  %v2688_v3 = vld [vmem:[%s2673_s24] sm:$0xff]  ;;  %vm607_vm2 = vcmask 261120   ;;  %v661_v20 = vlaneseq }
  0xcc   : > { %1788 = vmatprep.subr.bf16.mxu1 %v2308_v1  ;;  %1792 = vmatprep.mubr.msk.bf16.mxu1 %vm2309_vm1, %v2308_v1  ;;  %s2967_s23 = sld [smem:[#allocation24_spill]]  ;;  %v579_v5 = vpack.c.bf16 %v2688_v3, %v2688_v3  ;;  %s2968_s10 = sld [smem:[#allocation20_spill]]  ;;  %vm669_vm3 = vcmask 64512   ;;  %v576_v21 = vld [vmem:[%s566_s13] sm:$0x1]  ;;  %vm733_vm5 = vcmask 1043456  }
  0xcd   : > { %1802 = vmatprep.subr.bf16.mxu0 %v2308_v1  ;;  %1804 = vmatprep.mubr.msk.bf16.mxu0 %vm2309_vm1, %v2308_v1  ;;  %s2311_s28 = smov 120   ;;  %s2312_s2 = smov 88   ;;  %v662_v22 = vshrl.u32 %v661_v20, 7  ;;  %vm577_vm4 = vcmp.gt.f32.partialorder %v576_v21, 0.5  ;;  %v2313_v24 = vmov -1e+09  }
  0xce   : > { %v578_v25 = vsel %vm577_vm4, 0.0, %v2313_v24  ;;  %s2314_s5 = smov 64   ;;  %s2315_s13 = smov 56   ;;  %vm1455_vm6 = vcmask 523264  }
  0xcf   : > { %v663_v23 = vsub.s32 0, %v662_v22  ;;  %s2316_s4 = smov 112   ;;  %s2320_s16 = smov 48  }
  0xd0   : > { %s2975_s0 = sld [smem:[#allocation29_spill]]  ;;  %p2976_p3 = scmp.ne.s32.totalorder %s2957_s8, 0 }
  0xd1   : > { %s2678_s21 = sshll.u32 %s2965_s22, 4  ;;  %v2733_v26 = vrot.slane %v578_v25, %v663_v23 }
  0xd2   : > { %s582_s11 = scalar_lea.vmem %s2966_s14, %s2678_s21  ;;  %s2697_s12 = scalar_lea.vmem %s2967_s23, %s2678_s21 }
  0xd3   : > { %v2023_v2 = vld [vmem:[%s582_s11] sm:$0xff]   ;;  %v2024_v4 = vld [vmem:[%s582_s11 + $0x8] sm:$0xff]   ;;  %s587_s14 = scalar_lea.vmem %s2968_s10, %s2965_s22  ;;  %s2310_s11 = smov 96  }
  0xd4   : > { %1789 = vmatpush3.bf16.msra.mxu1 %v2023_v2  ;;  %v1710_v6 = vld [vmem:[%s587_s14] ss:$0 sm:$0xff]  ;;  %s2317_s10 = smov 80   ;;  %s2319_s23 = smov 104  }
  0xd5   : > { %1790 = vmatprep.subr.bf16.mxu1 %v2308_v1  ;;  %s2973_s14 = sld [smem:[#allocation27_spill]] }
  0xd8   : > { %1791 = vmatpush3.bf16.msra.mxu1 %v2024_v4 }
  0xd9   : > { %1796 = vmatprep.subr.bf16.mxu1 %v2308_v1 }
  0xdb   : > { %1793 = vmatmul.mubr.msk.bf16.vlgmr.msra.gmra.mrb[0].mxu1 %vm607_vm2, %v579_v5 }
  0xdc   : > { %1798 = vmatprep.mubr.msk.bf16.mxu1 %vm2309_vm1, %v2308_v1 }
 0x1ae   : > { %v645_v7 = vpop.f32.mrb[0].mxu1 }
 0x1af   : > { %v646_v8 = vadd.f32 %v1710_v6, %v645_v7  ;;  %v1794_v9 = vpop.f32.mrb[1].mxu1 }
 0x1b0   : > { %v648_v10 = vpop.f32.mrb[2].mxu1 }
 0x1b1   : > { %v651_v11 = vmul.f32 0.35355338, %v646_v8  ;;  %v2710_v12 = vpack.c.bf16 %v646_v8, %v646_v8  ;;  %v1795_v13 = vpop.f32.mrb[3].mxu1 }
 0x1b3   : > { %v2712_v14 = vpack.c.bf16 %v651_v11, %v651_v11  ;;  %667 = vrot.lane.b32.xlu0 %v2710_v12, %s2310_s11  ;;  %s2971_s11 = sld [smem:[#allocation25_spill]] }
 0x1b5   : > { %779 = vrot.lane.b32.xlu1 %v2712_v14, %s2311_s28  ;;  %s2970_s28 = sld [smem:[#allocation21_spill]] }
 0x1b7   : > { %781 = vrot.lane.b32.xlu0 %v2710_v12, %s2312_s2 }
 0x1bb   : > { %s2759_s2 = scalar_lea.vmem %s2970_s28, %s2678_s21  ;;  %s2318_s21 = smov 72  }
 0x1bc   : > { %v656_v61 = vld [vmem:[%s2759_s2] sm:$0xf]  ;;  %v657_v63 = vld [vmem:[%s2759_s2 + $0x4] sm:$0xf] }
 0x1bd   : > { %v940_v62 = vsel %vm733_vm5, %v656_v61, 0  ;;  %v894_v0 = vsel %vm733_vm5, %v657_v63, 0 }
 0x225   : > { %v668_v15 = vpop.permute.xlu0 %667 }
 0x226   : > { %v674_v16 = vsel %vm669_vm3, %v668_v15, 0 }
 0x227   : > { %1797 = vmatpush3.bf16.xpose.msra.mxu1 %v674_v16  ;;  %v780_v19 = vpop.permute.xlu1 %779 }
 0x228   : > { %1808 = vmatprep.subr.bf16.mxu1 %v2308_v1 }
 0x229   : > { %v782_v17 = vpop.permute.xlu0 %781 }
 0x22a   : > { %v787_v18 = vsel %vm669_vm3, %v782_v17, 0 }
 0x22e   : > { %1799 = vmatmul.mubr.msk.bf16.vlgmr.msra.gmra.mrb[4].mxu1 %vm669_vm3, %v2712_v14 }
 0x22f   : > { %1809 = vmatpush3.bf16.xpose.msra.mxu1 %v787_v18  ;;  %1810 = vmatprep.mubr.msk.bf16.mxu1 %vm2309_vm1, %v2308_v1 }
 0x230   : > { %1820 = vmatprep.subr.bf16.mxu1 %v2308_v1 }
 0x236   : > { %1811 = vmatmul.mubr.msk.bf16.vlgmr.msra.gmra.mrb[8].mxu1 %vm669_vm3, %v780_v19 }
 0x237   : > { %1822 = vmatprep.mubr.msk.bf16.mxu1 %vm2309_vm1, %v2308_v1  ;;  %1821 = vmatpush3.bf16.msra.mxu1 %v894_v0 }
 0x238   : > { %1832 = vmatprep.subr.bf16.mxu1 %v2308_v1 }
 0x301   : > { %v710_v27 = vpop.f32.mrb[4].mxu1 }
 0x302   : > { %v711_v28 = vadd.f32 %v710_v27, %v2733_v26  ;;  %v1800_v29 = vpop.f32.mrb[5].mxu1 }
 0x303   : > { %v713_v30 = vpop.f32.mrb[6].mxu1 }
 0x304   : > { %v1801_v31 = vpop.f32.mrb[7].mxu1  ;;  %v716_v32 = vsel %vm669_vm3, %v711_v28, -inf }
 0x305   : > { %717 = vmax.xlane.f32.xlu1 %v716_v32 }
 0x309   : > { %v823_v33 = vpop.f32.mrb[8].mxu1 }
 0x30a   : > { %v824_v34 = vadd.f32 %v823_v33, %v2733_v26  ;;  %v1812_v35 = vpop.f32.mrb[9].mxu1 }
 0x30b   : > { %v826_v36 = vpop.f32.mrb[10].mxu1 }
 0x30c   : > { %v1813_v37 = vpop.f32.mrb[11].mxu1  ;;  %v829_v38 = vsel %vm669_vm3, %v824_v34, -inf }
 0x30d   : > { %830 = vmax.xlane.f32.xlu0 %v829_v38 }
 0x392   : > { %v718_v39 = vpop.xlane.xlu1 %717 }
 0x393   : > { %v719_v40 = vsub.f32 %v711_v28, %v718_v39 }
 0x395   : > { %v720_v41 = vmul.f32 1.442695, %v719_v40 }
 0x397   : > { %2031 = vpow2.f32 %v720_v41 }
 0x39a   : > { %v831_v42 = vpop.xlane.xlu0 %830 }
 0x39b   : > { %v832_v43 = vsub.f32 %v824_v34, %v831_v42 }
 0x39d   : > { %v833_v44 = vmul.f32 1.442695, %v832_v43 }
 0x39f   : > { %2033 = vpow2.f32 %v833_v44 }
 0x3a1   : > { %v2032_v45 = vpop.eup %2031 }
 0x3a2   : > { %v722_v46 = vsel %vm669_vm3, %v2032_v45, 0.0 }
 0x3a3   : > { %723 = vadd.xlane.f32.xlu0 %v722_v46 }
 0x3a9   : > { %v2034_v47 = vpop.eup %2033 }
 0x3aa   : > { %v835_v48 = vsel %vm669_vm3, %v2034_v47, 0.0 }
 0x3ab   : > { %836 = vadd.xlane.f32.xlu1 %v835_v48 }
 0x3b9   : > { %728 = vrot.lane.b32.xlu0 %v2710_v12, %s2314_s5  ;;  %s2321_s5 = smov 40  }
 0x3bc   : > { %841 = vrot.lane.b32.xlu1 %v2710_v12, %s2315_s13  ;;  %s1298_s13 = scalar_lea.vmem [#allocation5], %s2965_s22 }
 0x3bd   : > { %982 = vrot.lane.b32.xlu0 %v2712_v14, %s2316_s4  ;;  %s1752_s4 = sshll.u32 %s2965_s22, 5 }
 0x3be   : > { %s1414_s28 = scalar_lea.vmem %s2971_s11, %s1752_s4  ;;  %s1513_s11 = scalar_lea.vmem %s2973_s14, %s2965_s22 }
 0x3c0   : > { %984 = vrot.lane.b32.xlu1 %v2710_v12, %s2317_s10 }
 0x430   : > { %v724_v49 = vpop.xlane.xlu0 %723 }
 0x431   : > { %2035 = vrcp.f32 %v724_v49 }
 0x434   : > { %v729_v50 = vpop.permute.xlu0 %728 }
 0x435   : > { %v735_v51 = vsel %vm733_vm5, %v729_v50, 0 }
 0x436   : > { %1803 = vmatpush3.bf16.msra.mxu0 %v735_v51 }
 0x437   : > { %1814 = vmatprep.subr.bf16.mxu0 %v2308_v1 }
 0x438   : > { %v837_v52 = vpop.xlane.xlu1 %836  ;;  %v983_v17 = vpop.permute.xlu0 %982 }
 0x439   : > { %2037 = vrcp.f32 %v837_v52 }
 0x43b   : > { %v2036_v53 = vpop.eup %2035 }
 0x43c   : > { %v726_v54 = vmul.f32 %v2036_v53, %v2032_v45  ;;  %v842_v55 = vpop.permute.xlu1 %841 }
 0x43d   : > { %v847_v57 = vsel %vm733_vm5, %v842_v55, 0 }
 0x43e   : > { %v727_v56 = vpack.c.bf16 %v726_v54, %v726_v54 }
 0x440   : > { %1805 = vmatmul.mubr.msk.bf16.vlgmr.msra.gmra.mrb[0].mxu0 %vm669_vm3, %v727_v56  ;;  %v985_v8 = vpop.permute.xlu1 %984 }
 0x441   : > { %1815 = vmatpush3.bf16.msra.mxu0 %v847_v57  ;;  %1816 = vmatprep.mubr.msk.bf16.mxu0 %vm2309_vm1, %v2308_v1  ;;  %v990_v15 = vsel %vm669_vm3, %v985_v8, 0 }
 0x442   : > { %1826 = vmatprep.subr.bf16.mxu0 %v2308_v1 }
 0x443   : > { %v2038_v58 = vpop.eup %2037 }
 0x444   : > { %v839_v59 = vmul.f32 %v2038_v58, %v2034_v47  ;;  %v658_v47 = vld [vmem:[%s2759_s2 + $0x8] sm:$0xf] }
 0x445   : > { %v1097_v48 = vsel %vm733_vm5, %v658_v47, 0 }
 0x446   : > { %v840_v60 = vpack.c.bf16 %v839_v59, %v839_v59 }
 0x448   : > { %1817 = vmatmul.mubr.msk.bf16.vlgmr.msra.gmra.mrb[4].mxu0 %vm669_vm3, %v840_v60 }
 0x449   : > { %1828 = vmatprep.mubr.msk.bf16.mxu0 %vm2309_vm1, %v2308_v1  ;;  %1827 = vmatpush3.bf16.msra.mxu0 %v940_v62 }
 0x44a   : > { %1838 = vmatprep.subr.bf16.mxu0 %v2308_v1 }
 0x513   : > { %v771_v2 = vpop.f32.mrb[0].mxu0 }
 0x514   : > { %v777_v4 = vpack.c.bf16 %v771_v2, %v771_v2  ;;  %v1806_v5 = vpop.f32.mrb[1].mxu0 }
 0x515   : > { %v774_v6 = vpop.f32.mrb[2].mxu0 }
 0x516   : > { %v1807_v7 = vpop.f32.mrb[3].mxu0  ;;  %1829 = vmatmul.mubr.msk.bf16.vlgmr.msra.gmra.mrb[8].mxu0 %vm669_vm3, %v777_v4  ;;  %v659_v4 = vld [vmem:[%s2759_s2 + $0xc] sm:$0xf]  ;;  %s1331_s2 = scalar_lea.vmem [#allocation8], %s2965_s22 }
 0x517   : > { %1840 = vmatprep.mubr.msk.bf16.mxu0 %vm2309_vm1, %v2308_v1  ;;  %v1255_v5 = vsel %vm733_vm5, %v659_v4, 0 }
 0x51b   : > { %v883_v9 = vpop.f32.mrb[4].mxu0 }
 0x51c   : > { %v889_v10 = vpack.c.bf16 %v883_v9, %v883_v9  ;;  %v1818_v11 = vpop.f32.mrb[5].mxu0 }
 0x51d   : > { %v886_v13 = vpop.f32.mrb[6].mxu0 }
 0x51e   : > { %v1819_v16 = vpop.f32.mrb[7].mxu0  ;;  %1823 = vmatmul.mubr.msk.bf16.vlgmr.msra.gmra.mrb[12].mxu1 %vm669_vm3, %v889_v10 }
 0x51f   : > { %1833 = vmatpush3.bf16.xpose.msra.mxu1 %v990_v15  ;;  %1834 = vmatprep.mubr.msk.bf16.mxu1 %vm2309_vm1, %v2308_v1 }
 0x520   : > { %1844 = vmatprep.subr.bf16.mxu1 %v2308_v1 }
 0x526   : > { %1835 = vmatmul.mubr.msk.bf16.vlgmr.msra.gmra.mrb[16].mxu1 %vm669_vm3, %v983_v17 }
 0x527   : > { %1846 = vmatprep.mubr.msk.bf16.mxu1 %vm2309_vm1, %v2308_v1  ;;  %1845 = vmatpush3.bf16.msra.mxu1 %v1097_v48  ;;  %v2029_v48 = vld [vmem:[%s1414_s28 + $0x10] sm:$0xff]  }
 0x528   : > { %1856 = vmatprep.subr.bf16.mxu1 %v2308_v1 }
 0x5e9   : > { %v976_v18 = vpop.f32.mrb[8].mxu0 }
 0x5ea   : > { %v1830_v19 = vpop.f32.mrb[9].mxu0 }
 0x5eb   : > { %v979_v20 = vpop.f32.mrb[10].mxu0 }
 0x5ec   : > { %v1831_v21 = vpop.f32.mrb[11].mxu0 }
 0x5f1   : > { %v930_v22 = vpop.f32.mrb[12].mxu1 }
 0x5f2   : > { %v2778_v23 = vadd.f32 %v976_v18, %v930_v22  ;;  %v1824_v24 = vpop.f32.mrb[13].mxu1  ;;  %v1727_v22 = vld [vmem:[%s1298_s13] ss:$0 sm:$0xff] }
 0x5f3   : > { %v933_v25 = vpop.f32.mrb[14].mxu1 }
 0x5f4   : > { %v1825_v27 = vpop.f32.mrb[15].mxu1 }
 0x5f9   : > { %v1026_v28 = vpop.f32.mrb[16].mxu1 }
 0x5fa   : > { %v1027_v29 = vadd.f32 %v1026_v28, %v2733_v26  ;;  %v1836_v30 = vpop.f32.mrb[17].mxu1 }
 0x5fb   : > { %v1029_v31 = vpop.f32.mrb[18].mxu1 }
 0x5fc   : > { %v1837_v32 = vpop.f32.mrb[19].mxu1  ;;  %v1032_v33 = vsel %vm669_vm3, %v1027_v29, -inf }
 0x5fd   : > { %1033 = vmax.xlane.f32.xlu1 %v1032_v33 }
 0x60e   : > { %1142 = vrot.lane.b32.xlu1 %v2710_v12, %s2318_s21  ;;  %s1347_s21 = scalar_lea.vmem [#allocation10], %s2965_s22 }
 0x612   : > { %1140 = vrot.lane.b32.xlu1 %v2712_v14, %s2319_s23  ;;  %s1746_s23 = sshll.u32 %s2287_s17, 7  ;;  %s2322_s17 = smov [#allocation11]  }
 0x613   : > { %s2855_s1 = scalar_lea.hbm %s2975_s0, %s1746_s23  ;;  %s2197_s10 = sshll.u32 %s2322_s17, 4  ;;  %s2198_s10 = int_to_ptr.vmem [resolvable:$false] %s2197_s10 }
 0x614   : > { %s2199_s14 = scalar_lea.vmem %s2198_s10, 256 }
 0x68a   : > { %v1034_v34 = vpop.xlane.xlu1 %1033 }
 0x68b   : > { %v1035_v35 = vsub.f32 %v1027_v29, %v1034_v34 }
 0x68d   : > { %v1036_v36 = vmul.f32 1.442695, %v1035_v35 }
 0x68e   : > { %v1143_v43 = vpop.permute.xlu1 %1142 }
 0x68f   : > { %2039 = vpow2.f32 %v1036_v36  ;;  %v1148_v45 = vsel %vm669_vm3, %v1143_v43, 0  ;;  %v2025_v36 = vld [vmem:[%s2697_s12] sm:$0xff]  }
 0x692   : > { %v1141_v46 = vpop.permute.xlu1 %1140 }
 0x699   : > { %v2040_v37 = vpop.eup %2039 }
 0x69a   : > { %v1038_v38 = vsel %vm669_vm3, %v2040_v37, 0.0 }
 0x69b   : > { %1039 = vadd.xlane.f32.xlu0 %v1038_v38  ;;  %v2028_v38 = vld [vmem:[%s1414_s28 + $0x8] sm:$0xff]  }
 0x6b1   : > { %1044 = vrot.lane.b32.xlu0 %v2710_v12, %s2320_s16  ;;  %s1546_s16 = sshll.u32 %s2673_s24, 4  ;;  %s2857_s16 = int_to_ptr.vmem [resolvable:$true] %s1546_s16 }
 0x6b2   : > { %s2193_s4 = scalar_lea.vmem %s2857_s16, 128  ;;  %p2200_p9 = scmp.lt.s32.totalorder %s2857_s16, %s2198_s10 }
 0x6b3   : > { %p2194_p7 = scmp.ne.s32.totalorder %s2857_s16, %s2193_s4  ;;  %p2201_p1 = scmp.lt.s32.totalorder %s2199_s14, %s2193_s4 }
 0x6b5   : > { %p2195_p6 = pnand %p2194_p7, %p2976_p3  ;;  %p2202_p11 = por %p2201_p1, %p2200_p9 }
 0x6b7   : > { %p2196_p8 = pneg %p2195_p6 }
 0x6b9   : > { %p2203_p13 = pnand %p2202_p11, %p2196_p8 }
 0x728   : > { %v1040_v39 = vpop.xlane.xlu0 %1039 }
 0x729   : > { %2041 = vrcp.f32 %v1040_v39 }
 0x72c   : > { %v1045_v40 = vpop.permute.xlu0 %1044 }
 0x72d   : > { %v1050_v41 = vsel %vm733_vm5, %v1045_v40, 0 }
 0x72e   : > { %1839 = vmatpush3.bf16.msra.mxu0 %v1050_v41 }
 0x72f   : > { %1850 = vmatprep.subr.bf16.mxu0 %v2308_v1 }
 0x733   : > { %v2042_v14 = vpop.eup %2041 }
 0x734   : > { %v1042_v42 = vmul.f32 %v2042_v14, %v2040_v37  ;;  %v2026_v37 = vld [vmem:[%s2697_s12 + $0x8] sm:$0xff]   ;;  %s1322_s12 = scalar_lea.vmem [#allocation7], %s2965_s22 }
 0x736   : > { %v1043_v44 = vpack.c.bf16 %v1042_v42, %v1042_v42  ;;  %v1728_v42 = vld [vmem:[%s1322_s12] ss:$0 sm:$0xff] }
 0x738   : > { %1841 = vmatmul.mubr.msk.bf16.vlgmr.msra.gmra.mrb[12].mxu0 %vm669_vm3, %v1043_v44  ;;  %v1729_v44 = vld [vmem:[%s1331_s2] ss:$0 sm:$0xff]  ;;  %s2974_s2 = sld [smem:[#allocation28_spill]] }
 0x739   : > { %1851 = vmatpush3.bf16.xpose.msra.mxu0 %v1148_v45  ;;  %1852 = vmatprep.mubr.msk.bf16.mxu0 %vm2309_vm1, %v2308_v1 }
 0x73a   : > { %1862 = vmatprep.subr.bf16.mxu0 %v2308_v1 }
 0x740   : > { %1853 = vmatmul.mubr.msk.bf16.vlgmr.msra.gmra.mrb[16].mxu0 %vm669_vm3, %v1141_v46 }
 0x741   : > { %1864 = vmatprep.mubr.msk.bf16.mxu0 %vm2309_vm1, %v2308_v1  ;;  %1863 = vmatpush3.bf16.msra.mxu0 %v1255_v5 }
 0x742   : > { %1876 = vmatprep.subr.bf16.mxu0 %v2308_v1 }
 0x80b   : > { %v1086_v49 = vpop.f32.mrb[12].mxu0 }
 0x80c   : > { %v1092_v50 = vpack.c.bf16 %v1086_v49, %v1086_v49  ;;  %v1842_v51 = vpop.f32.mrb[13].mxu0  ;;  %v2030_v49 = vld [vmem:[%s1414_s28 + $0x18] sm:$0xff]  }
 0x80d   : > { %v1089_v52 = vpop.f32.mrb[14].mxu0 }
 0x80e   : > { %v1843_v53 = vpop.f32.mrb[15].mxu0  ;;  %1847 = vmatmul.mubr.msk.bf16.vlgmr.msra.gmra.mrb[20].mxu1 %vm669_vm3, %v1092_v50  ;;  %v1731_v50 = vld [vmem:[%s1347_s21] ss:$0 sm:$0xff]  ;;  %s1522_s21 = scalar_lea.vmem %s2974_s2, %s2965_s22 }
 0x80f   : > { %1858 = vmatprep.mubr.msk.bf16.mxu1 %vm2309_vm1, %v2308_v1 }
 0x813   : > { %v1184_v54 = vpop.f32.mrb[16].mxu0 }
 0x814   : > { %v1185_v55 = vadd.f32 %v1184_v54, %v2733_v26  ;;  %v1854_v56 = vpop.f32.mrb[17].mxu0 }
 0x815   : > { %v1187_v57 = vpop.f32.mrb[18].mxu0 }
 0x816   : > { %v1855_v58 = vpop.f32.mrb[19].mxu0  ;;  %v1190_v59 = vsel %vm669_vm3, %v1185_v55, -inf }
 0x817   : > { %1191 = vmax.xlane.f32.xlu0 %v1190_v59 }
 0x82d   : > { %1202 = vrot.lane.b32.xlu0 %v2710_v12, %s2321_s5  ;;  %s2972_s5 = sld [smem:[#allocation26_spill]] }
 0x833   : > { %s1423_s13 = scalar_lea.vmem %s2972_s5, %s2965_s22  ;;  %s1533_s22 = scalar_lea.sflag [#allocation4], %s2649_s6 }
 0x834   : > { %v1737_v58 = vld [vmem:[%s1423_s13] ss:$0 sm:$0xff] }
 0x8a4   : > { %v1192_v60 = vpop.xlane.xlu0 %1191 }
 0x8a5   : > { %v1193_v61 = vsub.f32 %v1185_v55, %v1192_v60 }
 0x8a7   : > { %v1194_v62 = vmul.f32 1.442695, %v1193_v61 }
 0x8a8   : > { %v1203_v63 = vpop.permute.xlu0 %1202 }
 0x8a9   : > { %2043 = vpow2.f32 %v1194_v62  ;;  %v1208_v0 = vsel %vm733_vm5, %v1203_v63, 0 }
 0x8aa   : > { %1857 = vmatpush3.bf16.msra.mxu1 %v1208_v0 }
 0x8ab   : > { %1868 = vmatprep.subr.bf16.mxu1 %v2308_v1 }
 0x8b3   : > { %v2044_v26 = vpop.eup %2043 }
 0x8b4   : > { %v1196_v2 = vsel %vm669_vm3, %v2044_v26, 0.0 }
 0x8b5   : > { %1197 = vadd.xlane.f32.xlu1 %v1196_v2 }
 0x8e1   : > { %v1133_v12 = vpop.f32.mrb[20].mxu1 }
 0x8e2   : > { %v1139_v6 = vadd.f32 %v1133_v12, %v2778_v23  ;;  %v1848_v7 = vpop.f32.mrb[21].mxu1 }
 0x8e3   : > { %v1136_v8 = vpop.f32.mrb[22].mxu1 }
 0x8e4   : > { %v1849_v9 = vpop.f32.mrb[23].mxu1 }
 0x942   : > { %v1198_v10 = vpop.xlane.xlu1 %1197 }
 0x943   : > { %2045 = vrcp.f32 %v1198_v10  ;;  %v1743_v10 = vld [vmem:[%s1513_s11] ss:$0 sm:$0xff] }
 0x94d   : > { %v2046_v11 = vpop.eup %2045 }
 0x94e   : > { %v1200_v13 = vmul.f32 %v2046_v11, %v2044_v26 }
 0x950   : > { %v1201_v15 = vpack.c.bf16 %v1200_v13, %v1200_v13  ;;  %v1744_v13 = vld [vmem:[%s1522_s21] ss:$0 sm:$0xff] }
 0x952   : > { %1859 = vmatmul.mubr.msk.bf16.vlgmr.msra.gmra.mrb[24].mxu1 %vm669_vm3, %v1201_v15 }
 0x953   : > { %1872 = vmatprep.mubr.msk.bf16.mxu1 %vm2309_vm1, %v2308_v1  ;;  %1869 = vmatpush3.bf16.msra.mxu1 %v2025_v36 }
 0x954   : > { %1870 = vmatprep.subr.bf16.mxu1 %v2308_v1 }
 0x957   : > { %1871 = vmatpush3.bf16.msra.mxu1 %v2026_v37 }
 0xa25   : > { %v1244_v16 = vpop.f32.mrb[24].mxu1 }
 0xa26   : > { %v1250_v17 = vpack.c.bf16 %v1244_v16, %v1244_v16  ;;  %v1860_v18 = vpop.f32.mrb[25].mxu1 }
 0xa27   : > { %v1247_v19 = vpop.f32.mrb[26].mxu1 }
 0xa28   : > { %v1861_v20 = vpop.f32.mrb[27].mxu1  ;;  %1865 = vmatmul.mubr.msk.bf16.vlgmr.msra.gmra.mrb[20].mxu0 %vm669_vm3, %v1250_v17 }
 0xa29   : > { %1884 = vmatprep.mubr.msk.bf16.mxu0 %vm2309_vm1, %v2308_v1 }
 0xafb   : > { %v1291_v21 = vpop.f32.mrb[20].mxu0 }
 0xafc   : > { %v1297_v23 = vadd.f32 %v1291_v21, %v1139_v6  ;;  %v1866_v24 = vpop.f32.mrb[21].mxu0 }
 0xafd   : > { %v1294_v25 = vpop.f32.mrb[22].mxu0 }
 0xafe   : > { %v1306_v27 = vadd.f32 %v1727_v22, %v1297_v23  ;;  %v1867_v28 = vpop.f32.mrb[23].mxu0 }
 0xb00   : > { %v1307_v29 = vadd.f32 %v1306_v27, %v2688_v3  ;;  %v2027_v3 = vld [vmem:[%s1414_s28] sm:$0xff]  }
 0xb01   : > { %1877 = vmatpush3.bf16.msra.mxu0 %v2027_v3 }
 0xb02   : > { %v1308_v30 = vsel %vm607_vm2, %v1307_v29, 0.0  ;;  %1878 = vmatprep.subr.bf16.mxu0 %v2308_v1 }
 0xb03   : > { %1309 = vadd.xlane.f32.xlu1 %v1308_v30 }
 0xb05   : > { %1879 = vmatpush3.bf16.msra.mxu0 %v2028_v38 }
 0xb06   : > { %1880 = vmatprep.subr.bf16.mxu0 %v2308_v1 }
 0xb09   : > { %1881 = vmatpush3.bf16.msra.mxu0 %v2029_v48 }
 0xb0a   : > { %1882 = vmatprep.subr.bf16.mxu0 %v2308_v1 }
 0xb0d   : > { %1883 = vmatpush3.bf16.msra.mxu0 %v2030_v49 }
 0xb90   : > { %v1310_v31 = vpop.xlane.xlu1 %1309 }
 0xb91   : > { %v1312_v32 = vmul.f32 0.03125, %v1310_v31 }
 0xb93   : > { %v1313_v33 = vsub.f32 %v1307_v29, %v1312_v32 }
 0xb95   : > { %v1314_v34 = vmul.f32 %v1313_v33, %v1313_v33 }
 0xb97   : > { %v1315_v35 = vsel %vm607_vm2, %v1314_v34, 0.0 }
 0xb98   : > { %1316 = vadd.xlane.f32.xlu1 %v1315_v35 }
 0xc25   : > { %v1317_v39 = vpop.xlane.xlu1 %1316 }
 0xc26   : > { %v1318_v40 = vmul.f32 0.03125, %v1317_v39 }
 0xc28   : > { %v1319_v41 = vadd.f32 1e-05, %v1318_v40 }
 0xc2a   : > { %2047 = vrsqrt.f32 %v1319_v41 }
 0xc34   : > { %v2048_v14 = vpop.eup %2047 }
 0xc35   : > { %v1321_v43 = vmul.f32 %v2048_v14, %v1313_v33 }
 0xc37   : > { %v1330_v45 = vmul.f32 %v1728_v42, %v1321_v43 }
 0xc39   : > { %v1339_v46 = vadd.f32 %v1729_v44, %v1330_v45 }
 0xc3b   : > { %v1340_v47 = vpack.c.bf16 %v1339_v46, %v1339_v46 }
 0xc3d   : > { %1873 = vmatmul.mubr.msk.bf16.vlgmr.msra.gmra.mrb[28].mxu1 %vm607_vm2, %v1340_v47 }
 0xd10   : > { %v1404_v51 = vpop.f32.mrb[28].mxu1 }
 0xd11   : > { %v1405_v52 = vadd.f32 %v1731_v50, %v1404_v51  ;;  %v1874_v53 = vpop.f32.mrb[29].mxu1 }
 0xd12   : > { %v1407_v54 = vpop.f32.mrb[30].mxu1 }
 0xd13   : > { %v1410_v55 = vmax.f32 %v1405_v52, 0.0  ;;  %v1875_v56 = vpop.f32.mrb[31].mxu1 }
 0xd15   : > { %v1411_v57 = vpack.c.bf16 %v1410_v55, %v1410_v55 }
 0xd17   : > { %1885 = vmatmul.mubr.msk.bf16.vlgmr.msra.gmra.mrb[24].mxu0 %vm1455_vm6, %v1411_v57 }
 0xdea   : > { %v1493_v59 = vpop.f32.mrb[24].mxu0 }
 0xdeb   : > { %v1494_v1 = vadd.f32 %v1737_v58, %v1493_v59  ;;  %v1886_v60 = vpop.f32.mrb[25].mxu0 }
 0xdec   : > { %v1496_v61 = vpop.f32.mrb[26].mxu0 }
 0xded   : > { %v1887_v62 = vpop.f32.mrb[27].mxu0  ;;  %v1499_v63 = vadd.f32 %v1494_v1, %v1339_v46 }
 0xdef   : > { %v1500_v0 = vsel %vm607_vm2, %v1499_v63, 0.0 }
 0xdf0   : > { %1501 = vadd.xlane.f32.xlu1 %v1500_v0 }
 0xe7d   : > { %v1502_v26 = vpop.xlane.xlu1 %1501 }
 0xe7e   : > { %v1503_v2 = vmul.f32 0.03125, %v1502_v26 }
 0xe80   : > { %v1504_v4 = vsub.f32 %v1499_v63, %v1503_v2 }
 0xe82   : > { %v1505_v5 = vmul.f32 %v1504_v4, %v1504_v4 }
 0xe84   : > { %v1506_v12 = vsel %vm607_vm2, %v1505_v5, 0.0 }
 0xe85   : > { %1507 = vadd.xlane.f32.xlu1 %v1506_v12 }
 0xf12   : > { %v1508_v6 = vpop.xlane.xlu1 %1507 }
 0xf13   : > { %v1509_v7 = vmul.f32 0.03125, %v1508_v6 }
 0xf15   : > { %v1510_v8 = vadd.f32 1e-05, %v1509_v7 }
 0xf17   : > { %2049 = vrsqrt.f32 %v1510_v8 }
 0xf21   : > { %v2050_v9 = vpop.eup %2049 }
 0xf22   : > { %v1512_v11 = vmul.f32 %v2050_v9, %v1504_v4 }
 0xf24   : > { %v1521_v15 = vmul.f32 %v1743_v10, %v1512_v11 }
 0xf26   : > { %v1530_v16 = vadd.f32 %v1744_v13, %v1521_v15 }
 0xf28   : > { %1531 = vst.msk [vmem:[%s2673_s24] sm:$0xff] %vm607_vm2, %v1530_v16 }
 0xf29   : > { %2206 = shalt.err (!%p2203_p13)
}
 0xf2a   : > { %s2207_s6 = scalar_lea.hbm %s2855_s1, 128  ;;  %s2211_s28 = scalar_lea.hbm %s2975_s0, 256 }
 0xf2b   : > { %p2208_p5 = scmp.ne.s32.totalorder %s2855_s1, %s2207_s6  ;;  %p2212_p4 = scmp.lt.u32.totalorder %s2855_s1, %s2975_s0 }
 0xf2c   : > { %p2213_p10 = scmp.lt.u32.totalorder %s2211_s28, %s2207_s6  ;;  %p2215_p7 = scmp.lt.u32.totalorder %s2207_s6, %s2855_s1 }
 0xf2d   : > { %p2209_p0 = pnand %p2208_p5, %p2976_p3 }
 0xf2e   : > { %p2214_p2 = por %p2213_p10, %p2212_p4 }
 0xf2f   : > { %p2210_p12 = pneg %p2209_p0 }
 0xf30   : > { %p2216_p6 = por %p2215_p7, %p2214_p2 }
 0xf32   : > { %p2217_p8 = pnand %p2216_p6, %p2210_p12 }
 0xf34   : > { %2220 = shalt.err (!%p2217_p8)
}
 0xf35   : > { %1906 = dma.vmem_to_hbm [thread:$0]  (%p2976_p3), %s2857_s16, 128, %s2855_s1, %s1533_s22  }
 0xf36 PF: > { %p1938_p9 = scmp.ge.s32.totalorder %s2299_s20, 2  ;;  %s1558_s21 = sand.u32 1, %s2271_s29  }
 0xf37   : > { %p2977_p1 = scmp.ne.s32.totalorder %s2958_s27, 0  ;;  %s1559_s23 = scalar_lea.sflag [#allocation4], %s1558_s21 }
 0xf39   : > { %p1926_p11 = pnand %p1938_p9, %p2977_p1 }
 0xf3b   : > { %2266 = dma.done.wait (!%p1926_p11), %s1559_s23, 128  }
 0xf3c   : > { %2268 = vsyncadd (!%p1926_p11), %s1559_s23, 4294967168  ;;  %s32_s20 = sadd.s32 1, %s2299_s20   ;;  %s2978_s29 = smov %s2275_s30 }
 0xf3d   : > { %p29_p13 = scmp.ge.s32.totalorder %s32_s20, 6   ;;  %s2979_s30 = smov %s2279_s15 }
 0xf3e   : > { %s2980_s15 = smov %s2606_s25  ;;  %s2981_s16 = smov %s2291_s18 }
 0xf3f   : > { %s2982_s17 = smov %s2295_s19  ;;  %s2983_s18 = smov %s2986_s26 }
 0xf40   : > { %s2984_s19 = smov %s2990_s3  ;;  %31 = sbr.rel (!%p29_p13) target bundleno = 23 (0x17), region = 156 }
 0xf47   :  { %1564 = vsyncpa [#allocation3], 1 }
 0xf48   :  { %1566 = vsyncpa [#allocation3 + $0x1], 1 }
 0xf49   :  { %1567 = vsyncpa [#allocation6], 1 }
 0xf4a   :  { %1568 = vsyncpa [#allocation9], 1 }
 0xf4b   :  { %1569 = vsyncpa [#allocation4], 1 }
 0xf4c   :  { %1571 = vsyncpa [#allocation4 + $0x1], 1 }

</bundles_post_ra>
